<compile_context>
chip_gen: v7x
topology: tpu7x:2x2x1
jax: 0.10.0
libtpu: 0.0.40
codegen_flags: <defaults>
</compile_context>

<pallas_src>
import functools
import math

import jax
import jax.numpy as jnp
from jax import lax
from jax.experimental import pallas as pl
from jax.experimental.pallas import tpu as pltpu


# dtype used for MXU matmul operands (accumulation is always float32).
MXU_DTYPE = jnp.bfloat16


# ----------------------------------------------------------------------------
# Pallas kernel: HCAM forward for a block of Nb images in channel-major layout.
# Block shapes: x/o = (Nb, C, H*W); weights are (Cout, Cin); biases (Cout, 1).
# ----------------------------------------------------------------------------
def _hcam_kernel(x_ref, w1_ref, wdw_ref, wpw_ref,
                 law1_ref, lab1_ref, law2_ref, lab2_ref,
                 gaw1_ref, gab1_ref, gaw2_ref, gab2_ref,
                 o_ref, *, height, width, mxu_dtype):
    nb, c, l = x_ref.shape
    cm = w1_ref.shape[0]
    f32 = jnp.float32

    # Weights / biases: loaded (and cast) once per grid step, hoisted out of the
    # per-image loop.  MXU operands in bf16; biases and depthwise taps in f32.
    w1 = w1_ref[...].astype(mxu_dtype)      # (Cm, C)   conv1
    wpw = wpw_ref[...].astype(mxu_dtype)    # (C, Cm)   convPW
    law1 = law1_ref[...].astype(mxu_dtype)  # (Cm, C)   LA branch (BN folded)
    law2 = law2_ref[...].astype(mxu_dtype)  # (C, Cm)
    gaw1 = gaw1_ref[...]                    # (Cm, C)   GA branch stays f32 (tiny)
    gaw2 = gaw2_ref[...]                    # (C, Cm)
    wdw = wdw_ref[...]                      # (Cm, 9)   depthwise taps (VPU, f32)
    lab1 = lab1_ref[...]                    # (Cm, 1)
    lab2 = lab2_ref[...]                    # (C, 1)
    gab1 = gab1_ref[...]                    # (Cm, 1)
    gab2 = gab2_ref[...]                    # (C, 1)

    # Column-boundary masks for the 3x3 depthwise conv (built once; lanes = H*W).
    col = lax.broadcasted_iota(jnp.int32, (cm, l), 1) % width
    col_ok_left = col >= 1                  # taps with dj = -1
    col_ok_right = col <= width - 2         # taps with dj = +1

    def flat_shift(t, s):
        # y[:, p] = t[:, p + s] for 0 <= p + s < l, else 0   (s is a Python int).
        if s == 0:
            return t
        pad = jnp.zeros((cm, abs(s)), f32)
        if s > 0:
            return jnp.concatenate([t[:, s:], pad], axis=1)
        return jnp.concatenate([pad, t[:, :s]], axis=1)

    for n in range(nb):                     # small static batch-block loop
        x = x_ref[n]                        # (C, H*W) float32

        # --- conv1: 1x1, C -> Cm, no bias (MXU) ---
        xm = jnp.dot(w1, x.astype(mxu_dtype), preferred_element_type=f32)   # (Cm, L)

        # --- convDW: 3x3 depthwise, stride 1, pad 1: in-register 9-tap sum ---
        # Flattened pixel shift (ki-1)*W + (kj-1) plus a column mask reproduces
        # the zero-padded 3x3 window; the out-of-range rows are handled by the
        # zero fill of flat_shift.
        dw = None
        for ki in range(3):
            for kj in range(3):
                t = flat_shift(xm, (ki - 1) * width + (kj - 1))
                if kj == 0:
                    t = jnp.where(col_ok_left, t, 0.0)
                elif kj == 2:
                    t = jnp.where(col_ok_right, t, 0.0)
                t = t * wdw[:, ki * 3 + kj:ki * 3 + kj + 1]                 # (Cm, L)
                dw = t if dw is None else dw + t

        # --- convPW: 1x1, Cm -> C, no bias (MXU) ---
        x_pw = jnp.dot(wpw, dw.astype(mxu_dtype), preferred_element_type=f32)  # (C, L)

        # --- Local channel attention: conv1x1+BN -> ReLU -> conv1x1+BN (folded) ---
        la_h = jnp.maximum(
            jnp.dot(law1, x_pw.astype(mxu_dtype), preferred_element_type=f32) + lab1,
            0.0)                                                            # (Cm, L)
        la_o = jnp.dot(law2, la_h.astype(mxu_dtype), preferred_element_type=f32) + lab2

        # --- Global channel attention: GAP -> conv1x1+BN -> ReLU -> conv1x1+BN ---
        # GAP is a lane reduction; the (C, 1) result is lane-broadcast so the GA
        # matmuls reuse the same (out, C) @ (C, L) shape as everything else
        # (all columns identical; negligible cost at C = 16, Cm = 4).
        gap = jnp.broadcast_to(jnp.mean(x_pw, axis=1, keepdims=True), (c, l))
        ga_h = jnp.maximum(jnp.dot(gaw1, gap, preferred_element_type=f32) + gab1, 0.0)
        ga_o = jnp.dot(gaw2, ga_h, preferred_element_type=f32) + gab2       # (C, L)

        # GL_CA output = sigmoid(GCA) + sigmoid(LCA) + x_pw ; HCAM adds the residual.
        out = jax.nn.sigmoid(ga_o) + jax.nn.sigmoid(la_o) + x_pw + x
        o_ref[n] = out.astype(o_ref.dtype)                                  # lane-dense store


# ----------------------------------------------------------------------------
# Wrapper: batch-fused grid over blocks of Nb images, channel-major blocks.
# ----------------------------------------------------------------------------
def hcam_pallas(x_nchw, w1, wdw, wpw,
                law1, lab1, law2, lab2,
                gaw1, gab1, gaw2, gab2,
                *, batch_block=None, mxu_dtype=MXU_DTYPE):
    n, c, h, w = x_nchw.shape
    cm = w1.shape[0]
    l = h * w
    x = x_nchw.reshape(n, c, l)   # free: NCHW already has H*W contiguous per channel

    # Batch-block size: fuse as many images as fit a conservative VMEM budget
    # (in + out blocks are double-buffered by the pipeline; stay well under the
    # 32 MiB default scoped VMEM and v7x's 64 MiB physical VMEM).  For larger
    # blocks, also raise CompilerParams(vmem_limit_bytes=...).
    if batch_block is None:
        per_image = 2 * c * l * 4                       # in + out, f32
        batch_block = max(1, min(n, (8 * 1024 * 1024) // (2 * per_image)))
    while n % batch_block:
        batch_block -= 1
    nb = batch_block
    grid = (n // nb,)

    full = lambda i: (0, 0)
    in_specs = [
        pl.BlockSpec((nb, c, l), lambda i: (i, 0, 0)),   # x: one block of Nb images
        # The 11 weight/bias operands have constant index maps, so the pipeline
        # re-uses their VMEM copies across grid steps (no per-step re-fetch).
        pl.BlockSpec((cm, c), full),      # conv1 weight
        pl.BlockSpec((cm, 9), full),      # depthwise taps (row-major 3x3 per channel)
        pl.BlockSpec((c, cm), full),      # pointwise weight
        pl.BlockSpec((cm, c), full),      # LA w1 (BN folded)
        pl.BlockSpec((cm, 1), full),      # LA b1
        pl.BlockSpec((c, cm), full),      # LA w2
        pl.BlockSpec((c, 1), full),       # LA b2
        pl.BlockSpec((cm, c), full),      # GA w1
        pl.BlockSpec((cm, 1), full),      # GA b1
        pl.BlockSpec((c, cm), full),      # GA w2
        pl.BlockSpec((c, 1), full),       # GA b2
    ]
    out_specs = pl.BlockSpec((nb, c, l), lambda i: (i, 0, 0))

    kernel = functools.partial(_hcam_kernel, height=h, width=w, mxu_dtype=mxu_dtype)
    out = pl.pallas_call(
        kernel,
        out_shape=jax.ShapeDtypeStruct((n, c, l), jnp.float32),
        grid_spec=pltpu.PrefetchScalarGridSpec(
            num_scalar_prefetch=0,
            grid=grid,
            in_specs=in_specs,
            out_specs=out_specs,
        ),
        compiler_params=pltpu.CompilerParams(
            dimension_semantics=("parallel",),   # no cross-batch carry -> megacore OK
        ),
    )(x, w1, wdw, wpw,
      law1, lab1.reshape(cm, 1), law2, lab2.reshape(c, 1),
      gaw1, gab1.reshape(cm, 1), gaw2, gab2.reshape(c, 1))
    return out.reshape(n, c, h, w)


# ----------------------------------------------------------------------------
# Pure-JAX reference (NCHW, independent lax ops) for correctness checking.
# Matmul/1x1-conv operands are rounded through `mxu_dtype` exactly where the
# kernel casts them (accumulation stays f32), so the comparison isolates kernel
# bugs rather than expected bf16 operand rounding.
# ----------------------------------------------------------------------------
def hcam_reference(x_nchw, w1, wdw, wpw,
                   law1, lab1, law2, lab2,
                   gaw1, gab1, gaw2, gab2, *, mxu_dtype=jnp.float32):
    cm, c = w1.shape
    dn = ("NCHW", "OIHW", "NCHW")
    hi = lax.Precision.HIGHEST
    q = lambda a: a.astype(mxu_dtype).astype(jnp.float32)

    # Trunk
    xm = lax.conv_general_dilated(q(x_nchw), q(w1[:, :, None, None]), (1, 1), "VALID",
                                  dimension_numbers=dn, precision=hi)
    wdw_oihw = wdw.reshape(cm, 3, 3)[:, None, :, :]            # (Cm, 1, 3, 3)
    xdw = lax.conv_general_dilated(xm, wdw_oihw, (1, 1), ((1, 1), (1, 1)),
                                   dimension_numbers=dn, feature_group_count=cm,
                                   precision=hi)
    xpw = lax.conv_general_dilated(q(xdw), q(wpw[:, :, None, None]), (1, 1), "VALID",
                                   dimension_numbers=dn, precision=hi)

    # Local channel attention (BN folded)
    la_h = jax.nn.relu(jnp.einsum("mc,nchw->nmhw", q(law1), q(xpw), precision=hi)
                       + lab1[None, :, None, None])
    la_o = (jnp.einsum("cm,nmhw->nchw", q(law2), q(la_h), precision=hi)
            + lab2[None, :, None, None])

    # Global channel attention (kept in f32, as in the kernel)
    gap = jnp.mean(xpw, axis=(2, 3), keepdims=True)
    ga_h = jax.nn.relu(jnp.einsum("mc,nchw->nmhw", gaw1, gap, precision=hi)
                       + gab1[None, :, None, None])
    ga_o = (jnp.einsum("cm,nmhw->nchw", gaw2, ga_h, precision=hi)
            + gab2[None, :, None, None])

    return jax.nn.sigmoid(ga_o) + jax.nn.sigmoid(la_o) + xpw + x_nchw


# ----------------------------------------------------------------------------
# Deterministic parameter construction (per the module's __init__ shapes).
# ----------------------------------------------------------------------------
def fold_bn(w, b, gamma, beta, mean, var, eps=1e-5):
    """Fold inference-mode BatchNorm into a preceding 1x1 conv (w: (Cout, Cin))."""
    scale = gamma / jnp.sqrt(var + eps)
    return w * scale[:, None], (b - mean) * scale + beta


def make_branch_params(keys, c, cm):
    """conv(C->Cm)+BN(Cm)+ReLU+conv(Cm->C)+BN(C), with BN folded into the convs."""
    k = iter(keys)
    w1 = jax.random.normal(next(k), (cm, c), jnp.float32) / math.sqrt(c)
    b1 = 0.1 * jax.random.normal(next(k), (cm,), jnp.float32)
    g1 = 1.0 + 0.1 * jax.random.normal(next(k), (cm,), jnp.float32)
    be1 = 0.1 * jax.random.normal(next(k), (cm,), jnp.float32)
    m1 = 0.1 * jax.random.normal(next(k), (cm,), jnp.float32)
    v1 = jax.random.uniform(next(k), (cm,), jnp.float32, 0.5, 1.5)

    w2 = jax.random.normal(next(k), (c, cm), jnp.float32) / math.sqrt(cm)
    b2 = 0.1 * jax.random.normal(next(k), (c,), jnp.float32)
    g2 = 1.0 + 0.1 * jax.random.normal(next(k), (c,), jnp.float32)
    be2 = 0.1 * jax.random.normal(next(k), (c,), jnp.float32)
    m2 = 0.1 * jax.random.normal(next(k), (c,), jnp.float32)
    v2 = jax.random.uniform(next(k), (c,), jnp.float32, 0.5, 1.5)

    fw1, fb1 = fold_bn(w1, b1, g1, be1, m1, v1)
    fw2, fb2 = fold_bn(w2, b2, g2, be2, m2, v2)
    return fw1, fb1, fw2, fb2


if __name__ == "__main__":
    # Small shapes consistent with the module: NCHW input (N, C, H, W), r=4.
    N, C, H, W, r = 2, 16, 16, 16, 4
    Cm = C // r

    key = jax.random.PRNGKey(0)
    keys = jax.random.split(key, 32)

    # HCAM trunk weights (all bias-free convs in PyTorch), channel-major (out, in).
    w1 = jax.random.normal(keys[0], (Cm, C), jnp.float32) / math.sqrt(C)     # conv1  (1x1)
    wdw = jax.random.normal(keys[1], (Cm, 9), jnp.float32) / 3.0             # convDW (3x3 dw), col = ki*3+kj
    wpw = jax.random.normal(keys[2], (C, Cm), jnp.float32) / math.sqrt(Cm)   # convPW (1x1)

    # Local_Global_Channel_Att branches (BN folded, inference mode).
    law1, lab1, law2, lab2 = make_branch_params(keys[3:15], C, Cm)   # LA branch
    gaw1, gab1, gaw2, gab2 = make_branch_params(keys[15:27], C, Cm)  # GA branch

    x_nchw = jax.random.normal(keys[31], (N, C, H, W), jnp.float32)

    out = hcam_pallas(x_nchw, w1, wdw, wpw,
                      law1, lab1, law2, lab2,
                      gaw1, gab1, gaw2, gab2)
    out = jax.block_until_ready(out)

    ref = hcam_reference(x_nchw, w1, wdw, wpw,
                         law1, lab1, law2, lab2,
                         gaw1, gab1, gaw2, gab2, mxu_dtype=MXU_DTYPE)
    err = float(jnp.max(jnp.abs(out - ref)))
    # With bf16 MXU operands the only expected discrepancy vs the mirrored
    # reference is an occasional one-ulp double-rounding flip of a quantized
    # intermediate; 3e-2 covers that with margin (use 1e-3 for pure f32).
    tol = 3e-2 if MXU_DTYPE == jnp.bfloat16 else 1e-3
    assert err < tol, f"mismatch vs reference, max abs err = {err}"
    print("KERNEL_OK")
</pallas_src>

<mosaic_0001>
module attributes {stable_mosaic.version = 11 : i64} {
  func.func @_hcam_kernel(%arg0: i32, %arg1: memref<2x16x256xf32, #tpu.memory_space<vmem>>, %arg2: memref<4x16xf32, #tpu.memory_space<vmem>>, %arg3: memref<4x9xf32, #tpu.memory_space<vmem>>, %arg4: memref<16x4xf32, #tpu.memory_space<vmem>>, %arg5: memref<4x16xf32, #tpu.memory_space<vmem>>, %arg6: memref<4x1xf32, #tpu.memory_space<vmem>>, %arg7: memref<16x4xf32, #tpu.memory_space<vmem>>, %arg8: memref<16x1xf32, #tpu.memory_space<vmem>>, %arg9: memref<4x16xf32, #tpu.memory_space<vmem>>, %arg10: memref<4x1xf32, #tpu.memory_space<vmem>>, %arg11: memref<16x4xf32, #tpu.memory_space<vmem>>, %arg12: memref<16x1xf32, #tpu.memory_space<vmem>>, %arg13: memref<2x16x256xf32, #tpu.memory_space<vmem>>) attributes {dimension_semantics = [#tpu.dimension_semantics<parallel>], iteration_bounds = array<i64: 1>, scalar_prefetch = 0 : i64, scratch_operands = 0 : i64, tpu.core_type = #tpu.core_type<tc>, window_params = [{transform_indices = @transform_0, window_bounds = array<i64: 2, 16, 256>}, {pipeline_mode = #tpu.pipeline_mode<synchronous>, transform_indices = @transform_1, window_bounds = array<i64: 4, 16>}, {pipeline_mode = #tpu.pipeline_mode<synchronous>, transform_indices = @transform_2, window_bounds = array<i64: 4, 9>}, {pipeline_mode = #tpu.pipeline_mode<synchronous>, transform_indices = @transform_3, window_bounds = array<i64: 16, 4>}, {pipeline_mode = #tpu.pipeline_mode<synchronous>, transform_indices = @transform_4, window_bounds = array<i64: 4, 16>}, {pipeline_mode = #tpu.pipeline_mode<synchronous>, transform_indices = @transform_5, window_bounds = array<i64: 4, 1>}, {pipeline_mode = #tpu.pipeline_mode<synchronous>, transform_indices = @transform_6, window_bounds = array<i64: 16, 4>}, {pipeline_mode = #tpu.pipeline_mode<synchronous>, transform_indices = @transform_7, window_bounds = array<i64: 16, 1>}, {pipeline_mode = #tpu.pipeline_mode<synchronous>, transform_indices = @transform_8, window_bounds = array<i64: 4, 16>}, {pipeline_mode = #tpu.pipeline_mode<synchronous>, transform_indices = @transform_9, window_bounds = array<i64: 4, 1>}, {pipeline_mode = #tpu.pipeline_mode<synchronous>, transform_indices = @transform_10, window_bounds = array<i64: 16, 4>}, {pipeline_mode = #tpu.pipeline_mode<synchronous>, transform_indices = @transform_11, window_bounds = array<i64: 16, 1>}, {transform_indices = @transform_12, window_bounds = array<i64: 2, 16, 256>}]} {
    %c0 = arith.constant 0 : index
    %c0_0 = arith.constant 0 : index
    %0 = vector.load %arg2[%c0, %c0_0] : memref<4x16xf32, #tpu.memory_space<vmem>>, vector<4x16xf32>
    %1 = arith.truncf %0 : vector<4x16xf32> to vector<4x16xbf16>
    %c0_1 = arith.constant 0 : index
    %c0_2 = arith.constant 0 : index
    %2 = vector.load %arg4[%c0_1, %c0_2] : memref<16x4xf32, #tpu.memory_space<vmem>>, vector<16x4xf32>
    %3 = arith.truncf %2 : vector<16x4xf32> to vector<16x4xbf16>
    %c0_3 = arith.constant 0 : index
    %c0_4 = arith.constant 0 : index
    %4 = vector.load %arg5[%c0_3, %c0_4] : memref<4x16xf32, #tpu.memory_space<vmem>>, vector<4x16xf32>
    %5 = arith.truncf %4 : vector<4x16xf32> to vector<4x16xbf16>
    %c0_5 = arith.constant 0 : index
    %c0_6 = arith.constant 0 : index
    %6 = vector.load %arg7[%c0_5, %c0_6] : memref<16x4xf32, #tpu.memory_space<vmem>>, vector<16x4xf32>
    %7 = arith.truncf %6 : vector<16x4xf32> to vector<16x4xbf16>
    %c0_7 = arith.constant 0 : index
    %c0_8 = arith.constant 0 : index
    %8 = vector.load %arg9[%c0_7, %c0_8] : memref<4x16xf32, #tpu.memory_space<vmem>>, vector<4x16xf32>
    %c0_9 = arith.constant 0 : index
    %c0_10 = arith.constant 0 : index
    %9 = vector.load %arg11[%c0_9, %c0_10] : memref<16x4xf32, #tpu.memory_space<vmem>>, vector<16x4xf32>
    %c0_11 = arith.constant 0 : index
    %c0_12 = arith.constant 0 : index
    %10 = vector.load %arg3[%c0_11, %c0_12] : memref<4x9xf32, #tpu.memory_space<vmem>>, vector<4x9xf32>
    %c0_13 = arith.constant 0 : index
    %c0_14 = arith.constant 0 : index
    %11 = vector.load %arg6[%c0_13, %c0_14] : memref<4x1xf32, #tpu.memory_space<vmem>>, vector<4x1xf32>
    %c0_15 = arith.constant 0 : index
    %c0_16 = arith.constant 0 : index
    %12 = vector.load %arg8[%c0_15, %c0_16] : memref<16x1xf32, #tpu.memory_space<vmem>>, vector<16x1xf32>
    %c0_17 = arith.constant 0 : index
    %c0_18 = arith.constant 0 : index
    %13 = vector.load %arg10[%c0_17, %c0_18] : memref<4x1xf32, #tpu.memory_space<vmem>>, vector<4x1xf32>
    %c0_19 = arith.constant 0 : index
    %c0_20 = arith.constant 0 : index
    %14 = vector.load %arg12[%c0_19, %c0_20] : memref<16x1xf32, #tpu.memory_space<vmem>>, vector<16x1xf32>
    %15 = tpu.iota {dimensions = array<i32: 1>} : vector<4x256xi32>
    %c16_i32 = arith.constant 16 : i32
    %c0_i32 = arith.constant 0 : i32
    %16 = arith.cmpi eq, %c16_i32, %c0_i32 : i32
    %c1_i32 = arith.constant 1 : i32
    %17 = arith.select %16, %c1_i32, %c16_i32 : i32
    %18 = vector.broadcast %17 : i32 to vector<4x256xi32>
    %19 = arith.remsi %15, %18 : vector<4x256xi32>
    %c0_i32_21 = arith.constant 0 : i32
    %20 = vector.broadcast %c0_i32_21 : i32 to vector<4x256xi32>
    %21 = arith.cmpi ne, %19, %20 : vector<4x256xi32>
    %c0_i32_22 = arith.constant 0 : i32
    %22 = vector.broadcast %c0_i32_22 : i32 to vector<4x256xi32>
    %23 = arith.cmpi slt, %19, %22 : vector<4x256xi32>
    %c0_i32_23 = arith.constant 0 : i32
    %24 = arith.cmpi slt, %17, %c0_i32_23 : i32
    %25 = vector.broadcast %24 : i1 to vector<4x256xi1>
    %26 = vector.broadcast %25 : vector<4x256xi1> to vector<4x256xi1>
    %27 = arith.xori %23, %26 : vector<4x256xi1>
    %28 = arith.andi %27, %21 : vector<4x256xi1>
    %29 = vector.broadcast %17 : i32 to vector<4x256xi32>
    %30 = arith.addi %19, %29 : vector<4x256xi32>
    %31 = arith.select %28, %30, %19 : vector<4x256xi1>, vector<4x256xi32>
    %c1_i32_24 = arith.constant 1 : i32
    %32 = vector.broadcast %c1_i32_24 : i32 to vector<4x256xi32>
    %33 = arith.cmpi sge, %31, %32 : vector<4x256xi32>
    %c14_i32 = arith.constant 14 : i32
    %34 = vector.broadcast %c14_i32 : i32 to vector<4x256xi32>
    %35 = arith.cmpi sle, %31, %34 : vector<4x256xi32>
    %c0_25 = arith.constant 0 : index
    %c0_26 = arith.constant 0 : index
    %c0_27 = arith.constant 0 : index
    %36 = vector.load %arg1[%c0_25, %c0_26, %c0_27] : memref<2x16x256xf32, #tpu.memory_space<vmem>>, vector<1x16x256xf32>
    %37 = vector.shape_cast %36 : vector<1x16x256xf32> to vector<16x256xf32>
    %38 = arith.truncf %37 : vector<16x256xf32> to vector<16x256xbf16>
    %cst = arith.constant dense<0.000000e+00> : vector<4x256xf32>
    %39 = tpu.matmul %1, %38, %cst {dimension_numbers = #tpu.dot_dimension_numbers<[1], [0], [0], [1], [0, 0, 1, 1], [], []>} : vector<4x16xbf16>, vector<16x256xbf16>, vector<4x256xf32> -> vector<4x256xf32>
    %cst_28 = arith.constant 0.000000e+00 : f32
    %40 = vector.broadcast %cst_28 : f32 to vector<4x17xf32>
    %41 = vector.extract_strided_slice %39 {offsets = [0, 0], sizes = [4, 239], strides = [1, 1]} : vector<4x256xf32> to vector<4x239xf32>
    %42 = tpu.concatenate %40, %41 in 1 : vector<4x17xf32>, vector<4x239xf32> -> vector<4x256xf32>
    %cst_29 = arith.constant 0.000000e+00 : f32
    %43 = vector.broadcast %cst_29 : f32 to vector<4x256xf32>
    %44 = arith.select %33, %42, %43 : vector<4x256xi1>, vector<4x256xf32>
    %45 = vector.extract_strided_slice %10 {offsets = [0, 0], sizes = [4, 1], strides = [1, 1]} : vector<4x9xf32> to vector<4x1xf32>
    %46 = vector.broadcast %45 : vector<4x1xf32> to vector<4x256xf32>
    %47 = arith.mulf %44, %46 : vector<4x256xf32>
    %cst_30 = arith.constant 0.000000e+00 : f32
    %48 = vector.broadcast %cst_30 : f32 to vector<4x16xf32>
    %49 = vector.extract_strided_slice %39 {offsets = [0, 0], sizes = [4, 240], strides = [1, 1]} : vector<4x256xf32> to vector<4x240xf32>
    %50 = tpu.concatenate %48, %49 in 1 : vector<4x16xf32>, vector<4x240xf32> -> vector<4x256xf32>
    %51 = vector.extract_strided_slice %10 {offsets = [0, 1], sizes = [4, 1], strides = [1, 1]} : vector<4x9xf32> to vector<4x1xf32>
    %52 = vector.broadcast %51 : vector<4x1xf32> to vector<4x256xf32>
    %53 = arith.mulf %50, %52 : vector<4x256xf32>
    %54 = arith.addf %47, %53 : vector<4x256xf32>
    %cst_31 = arith.constant 0.000000e+00 : f32
    %55 = vector.broadcast %cst_31 : f32 to vector<4x15xf32>
    %56 = vector.extract_strided_slice %39 {offsets = [0, 0], sizes = [4, 241], strides = [1, 1]} : vector<4x256xf32> to vector<4x241xf32>
    %57 = tpu.concatenate %55, %56 in 1 : vector<4x15xf32>, vector<4x241xf32> -> vector<4x256xf32>
    %cst_32 = arith.constant 0.000000e+00 : f32
    %58 = vector.broadcast %cst_32 : f32 to vector<4x256xf32>
    %59 = arith.select %35, %57, %58 : vector<4x256xi1>, vector<4x256xf32>
    %60 = vector.extract_strided_slice %10 {offsets = [0, 2], sizes = [4, 1], strides = [1, 1]} : vector<4x9xf32> to vector<4x1xf32>
    %61 = vector.broadcast %60 : vector<4x1xf32> to vector<4x256xf32>
    %62 = arith.mulf %59, %61 : vector<4x256xf32>
    %63 = arith.addf %54, %62 : vector<4x256xf32>
    %cst_33 = arith.constant 0.000000e+00 : f32
    %64 = vector.broadcast %cst_33 : f32 to vector<4x1xf32>
    %65 = vector.extract_strided_slice %39 {offsets = [0, 0], sizes = [4, 255], strides = [1, 1]} : vector<4x256xf32> to vector<4x255xf32>
    %66 = tpu.concatenate %64, %65 in 1 : vector<4x1xf32>, vector<4x255xf32> -> vector<4x256xf32>
    %cst_34 = arith.constant 0.000000e+00 : f32
    %67 = vector.broadcast %cst_34 : f32 to vector<4x256xf32>
    %68 = arith.select %33, %66, %67 : vector<4x256xi1>, vector<4x256xf32>
    %69 = vector.extract_strided_slice %10 {offsets = [0, 3], sizes = [4, 1], strides = [1, 1]} : vector<4x9xf32> to vector<4x1xf32>
    %70 = vector.broadcast %69 : vector<4x1xf32> to vector<4x256xf32>
    %71 = arith.mulf %68, %70 : vector<4x256xf32>
    %72 = arith.addf %63, %71 : vector<4x256xf32>
    %73 = vector.extract_strided_slice %10 {offsets = [0, 4], sizes = [4, 1], strides = [1, 1]} : vector<4x9xf32> to vector<4x1xf32>
    %74 = vector.broadcast %73 : vector<4x1xf32> to vector<4x256xf32>
    %75 = arith.mulf %39, %74 : vector<4x256xf32>
    %76 = arith.addf %72, %75 : vector<4x256xf32>
    %cst_35 = arith.constant 0.000000e+00 : f32
    %77 = vector.broadcast %cst_35 : f32 to vector<4x1xf32>
    %78 = vector.extract_strided_slice %39 {offsets = [0, 1], sizes = [4, 255], strides = [1, 1]} : vector<4x256xf32> to vector<4x255xf32>
    %79 = tpu.concatenate %78, %77 in 1 : vector<4x255xf32>, vector<4x1xf32> -> vector<4x256xf32>
    %cst_36 = arith.constant 0.000000e+00 : f32
    %80 = vector.broadcast %cst_36 : f32 to vector<4x256xf32>
    %81 = arith.select %35, %79, %80 : vector<4x256xi1>, vector<4x256xf32>
    %82 = vector.extract_strided_slice %10 {offsets = [0, 5], sizes = [4, 1], strides = [1, 1]} : vector<4x9xf32> to vector<4x1xf32>
    %83 = vector.broadcast %82 : vector<4x1xf32> to vector<4x256xf32>
    %84 = arith.mulf %81, %83 : vector<4x256xf32>
    %85 = arith.addf %76, %84 : vector<4x256xf32>
    %cst_37 = arith.constant 0.000000e+00 : f32
    %86 = vector.broadcast %cst_37 : f32 to vector<4x15xf32>
    %87 = vector.extract_strided_slice %39 {offsets = [0, 15], sizes = [4, 241], strides = [1, 1]} : vector<4x256xf32> to vector<4x241xf32>
    %88 = tpu.concatenate %87, %86 in 1 : vector<4x241xf32>, vector<4x15xf32> -> vector<4x256xf32>
    %cst_38 = arith.constant 0.000000e+00 : f32
    %89 = vector.broadcast %cst_38 : f32 to vector<4x256xf32>
    %90 = arith.select %33, %88, %89 : vector<4x256xi1>, vector<4x256xf32>
    %91 = vector.extract_strided_slice %10 {offsets = [0, 6], sizes = [4, 1], strides = [1, 1]} : vector<4x9xf32> to vector<4x1xf32>
    %92 = vector.broadcast %91 : vector<4x1xf32> to vector<4x256xf32>
    %93 = arith.mulf %90, %92 : vector<4x256xf32>
    %94 = arith.addf %85, %93 : vector<4x256xf32>
    %cst_39 = arith.constant 0.000000e+00 : f32
    %95 = vector.broadcast %cst_39 : f32 to vector<4x16xf32>
    %96 = vector.extract_strided_slice %39 {offsets = [0, 16], sizes = [4, 240], strides = [1, 1]} : vector<4x256xf32> to vector<4x240xf32>
    %97 = tpu.concatenate %96, %95 in 1 : vector<4x240xf32>, vector<4x16xf32> -> vector<4x256xf32>
    %98 = vector.extract_strided_slice %10 {offsets = [0, 7], sizes = [4, 1], strides = [1, 1]} : vector<4x9xf32> to vector<4x1xf32>
    %99 = vector.broadcast %98 : vector<4x1xf32> to vector<4x256xf32>
    %100 = arith.mulf %97, %99 : vector<4x256xf32>
    %101 = arith.addf %94, %100 : vector<4x256xf32>
    %cst_40 = arith.constant 0.000000e+00 : f32
    %102 = vector.broadcast %cst_40 : f32 to vector<4x17xf32>
    %103 = vector.extract_strided_slice %39 {offsets = [0, 17], sizes = [4, 239], strides = [1, 1]} : vector<4x256xf32> to vector<4x239xf32>
    %104 = tpu.concatenate %103, %102 in 1 : vector<4x239xf32>, vector<4x17xf32> -> vector<4x256xf32>
    %cst_41 = arith.constant 0.000000e+00 : f32
    %105 = vector.broadcast %cst_41 : f32 to vector<4x256xf32>
    %106 = arith.select %35, %104, %105 : vector<4x256xi1>, vector<4x256xf32>
    %107 = vector.extract_strided_slice %10 {offsets = [0, 8], sizes = [4, 1], strides = [1, 1]} : vector<4x9xf32> to vector<4x1xf32>
    %108 = vector.broadcast %107 : vector<4x1xf32> to vector<4x256xf32>
    %109 = arith.mulf %106, %108 : vector<4x256xf32>
    %110 = arith.addf %101, %109 : vector<4x256xf32>
    %111 = arith.truncf %110 : vector<4x256xf32> to vector<4x256xbf16>
    %cst_42 = arith.constant dense<0.000000e+00> : vector<16x256xf32>
    %112 = tpu.matmul %3, %111, %cst_42 {dimension_numbers = #tpu.dot_dimension_numbers<[1], [0], [0], [1], [0, 0, 1, 1], [], []>} : vector<16x4xbf16>, vector<4x256xbf16>, vector<16x256xf32> -> vector<16x256xf32>
    %113 = arith.truncf %112 : vector<16x256xf32> to vector<16x256xbf16>
    %cst_43 = arith.constant dense<0.000000e+00> : vector<4x256xf32>
    %114 = tpu.matmul %5, %113, %cst_43 {dimension_numbers = #tpu.dot_dimension_numbers<[1], [0], [0], [1], [0, 0, 1, 1], [], []>} : vector<4x16xbf16>, vector<16x256xbf16>, vector<4x256xf32> -> vector<4x256xf32>
    %115 = vector.broadcast %11 : vector<4x1xf32> to vector<4x256xf32>
    %116 = arith.addf %114, %115 : vector<4x256xf32>
    %cst_44 = arith.constant 0.000000e+00 : f32
    %117 = vector.broadcast %cst_44 : f32 to vector<4x256xf32>
    %118 = arith.maximumf %116, %117 : vector<4x256xf32>
    %119 = arith.truncf %118 : vector<4x256xf32> to vector<4x256xbf16>
    %cst_45 = arith.constant dense<0.000000e+00> : vector<16x256xf32>
    %120 = tpu.matmul %7, %119, %cst_45 {dimension_numbers = #tpu.dot_dimension_numbers<[1], [0], [0], [1], [0, 0, 1, 1], [], []>} : vector<16x4xbf16>, vector<4x256xbf16>, vector<16x256xf32> -> vector<16x256xf32>
    %121 = vector.broadcast %12 : vector<16x1xf32> to vector<16x256xf32>
    %122 = arith.addf %120, %121 : vector<16x256xf32>
    %cst_46 = arith.constant dense<0.000000e+00> : vector<16xf32>
    %123 = vector.multi_reduction <add>, %112, %cst_46 [1] : vector<16x256xf32> to vector<16xf32>
    %124 = vector.shape_cast %123 : vector<16xf32> to vector<16x1xf32>
    %cst_47 = arith.constant 2.560000e+02 : f32
    %125 = vector.broadcast %cst_47 : f32 to vector<16x1xf32>
    %126 = arith.divf %124, %125 : vector<16x1xf32>
    %127 = vector.shape_cast %126 : vector<16x1xf32> to vector<16x1xf32>
    %128 = vector.broadcast %127 : vector<16x1xf32> to vector<16x256xf32>
    %cst_48 = arith.constant dense<0.000000e+00> : vector<4x256xf32>
    %129 = tpu.matmul %8, %128, %cst_48 {dimension_numbers = #tpu.dot_dimension_numbers<[1], [0], [0], [1], [0, 0, 1, 1], [], []>} : vector<4x16xf32>, vector<16x256xf32>, vector<4x256xf32> -> vector<4x256xf32>
    %130 = vector.broadcast %13 : vector<4x1xf32> to vector<4x256xf32>
    %131 = arith.addf %129, %130 : vector<4x256xf32>
    %cst_49 = arith.constant 0.000000e+00 : f32
    %132 = vector.broadcast %cst_49 : f32 to vector<4x256xf32>
    %133 = arith.maximumf %131, %132 : vector<4x256xf32>
    %cst_50 = arith.constant dense<0.000000e+00> : vector<16x256xf32>
    %134 = tpu.matmul %9, %133, %cst_50 {dimension_numbers = #tpu.dot_dimension_numbers<[1], [0], [0], [1], [0, 0, 1, 1], [], []>} : vector<16x4xf32>, vector<4x256xf32>, vector<16x256xf32> -> vector<16x256xf32>
    %135 = vector.broadcast %14 : vector<16x1xf32> to vector<16x256xf32>
    %136 = arith.addf %134, %135 : vector<16x256xf32>
    %137 = arith.negf %136 : vector<16x256xf32>
    %138 = math.exp %137 : vector<16x256xf32>
    %cst_51 = arith.constant 1.000000e+00 : f32
    %139 = vector.broadcast %cst_51 : f32 to vector<16x256xf32>
    %140 = arith.addf %139, %138 : vector<16x256xf32>
    %141 = arith.divf %139, %140 : vector<16x256xf32>
    %142 = arith.negf %122 : vector<16x256xf32>
    %143 = math.exp %142 : vector<16x256xf32>
    %cst_52 = arith.constant 1.000000e+00 : f32
    %144 = vector.broadcast %cst_52 : f32 to vector<16x256xf32>
    %145 = arith.addf %144, %143 : vector<16x256xf32>
    %146 = arith.divf %144, %145 : vector<16x256xf32>
    %147 = arith.addf %141, %146 : vector<16x256xf32>
    %148 = arith.addf %147, %112 : vector<16x256xf32>
    %149 = arith.addf %148, %37 : vector<16x256xf32>
    %c0_53 = arith.constant 0 : index
    %c0_54 = arith.constant 0 : index
    %c0_55 = arith.constant 0 : index
    %150 = vector.load %arg13[%c0_53, %c0_54, %c0_55] : memref<2x16x256xf32, #tpu.memory_space<vmem>>, vector<1x16x256xf32>
    %151 = vector.shape_cast %150 : vector<1x16x256xf32> to vector<16x256xf32>
    %152 = vector.shape_cast %149 : vector<16x256xf32> to vector<1x16x256xf32>
    tpu.vector_store %arg13[%c0_53, %c0_54, %c0_55], %152 {strides = array<i32>} : memref<2x16x256xf32, #tpu.memory_space<vmem>>, vector<1x16x256xf32>,
    %c1 = arith.constant 1 : index
    %c0_56 = arith.constant 0 : index
    %c0_57 = arith.constant 0 : index
    %153 = vector.load %arg1[%c1, %c0_56, %c0_57] : memref<2x16x256xf32, #tpu.memory_space<vmem>>, vector<1x16x256xf32>
    %154 = vector.shape_cast %153 : vector<1x16x256xf32> to vector<16x256xf32>
    %155 = arith.truncf %154 : vector<16x256xf32> to vector<16x256xbf16>
    %cst_58 = arith.constant dense<0.000000e+00> : vector<4x256xf32>
    %156 = tpu.matmul %1, %155, %cst_58 {dimension_numbers = #tpu.dot_dimension_numbers<[1], [0], [0], [1], [0, 0, 1, 1], [], []>} : vector<4x16xbf16>, vector<16x256xbf16>, vector<4x256xf32> -> vector<4x256xf32>
    %cst_59 = arith.constant 0.000000e+00 : f32
    %157 = vector.broadcast %cst_59 : f32 to vector<4x17xf32>
    %158 = vector.extract_strided_slice %156 {offsets = [0, 0], sizes = [4, 239], strides = [1, 1]} : vector<4x256xf32> to vector<4x239xf32>
    %159 = tpu.concatenate %157, %158 in 1 : vector<4x17xf32>, vector<4x239xf32> -> vector<4x256xf32>
    %cst_60 = arith.constant 0.000000e+00 : f32
    %160 = vector.broadcast %cst_60 : f32 to vector<4x256xf32>
    %161 = arith.select %33, %159, %160 : vector<4x256xi1>, vector<4x256xf32>
    %162 = vector.extract_strided_slice %10 {offsets = [0, 0], sizes = [4, 1], strides = [1, 1]} : vector<4x9xf32> to vector<4x1xf32>
    %163 = vector.broadcast %162 : vector<4x1xf32> to vector<4x256xf32>
    %164 = arith.mulf %161, %163 : vector<4x256xf32>
    %cst_61 = arith.constant 0.000000e+00 : f32
    %165 = vector.broadcast %cst_61 : f32 to vector<4x16xf32>
    %166 = vector.extract_strided_slice %156 {offsets = [0, 0], sizes = [4, 240], strides = [1, 1]} : vector<4x256xf32> to vector<4x240xf32>
    %167 = tpu.concatenate %165, %166 in 1 : vector<4x16xf32>, vector<4x240xf32> -> vector<4x256xf32>
    %168 = vector.extract_strided_slice %10 {offsets = [0, 1], sizes = [4, 1], strides = [1, 1]} : vector<4x9xf32> to vector<4x1xf32>
    %169 = vector.broadcast %168 : vector<4x1xf32> to vector<4x256xf32>
    %170 = arith.mulf %167, %169 : vector<4x256xf32>
    %171 = arith.addf %164, %170 : vector<4x256xf32>
    %cst_62 = arith.constant 0.000000e+00 : f32
    %172 = vector.broadcast %cst_62 : f32 to vector<4x15xf32>
    %173 = vector.extract_strided_slice %156 {offsets = [0, 0], sizes = [4, 241], strides = [1, 1]} : vector<4x256xf32> to vector<4x241xf32>
    %174 = tpu.concatenate %172, %173 in 1 : vector<4x15xf32>, vector<4x241xf32> -> vector<4x256xf32>
    %cst_63 = arith.constant 0.000000e+00 : f32
    %175 = vector.broadcast %cst_63 : f32 to vector<4x256xf32>
    %176 = arith.select %35, %174, %175 : vector<4x256xi1>, vector<4x256xf32>
    %177 = vector.extract_strided_slice %10 {offsets = [0, 2], sizes = [4, 1], strides = [1, 1]} : vector<4x9xf32> to vector<4x1xf32>
    %178 = vector.broadcast %177 : vector<4x1xf32> to vector<4x256xf32>
    %179 = arith.mulf %176, %178 : vector<4x256xf32>
    %180 = arith.addf %171, %179 : vector<4x256xf32>
    %cst_64 = arith.constant 0.000000e+00 : f32
    %181 = vector.broadcast %cst_64 : f32 to vector<4x1xf32>
    %182 = vector.extract_strided_slice %156 {offsets = [0, 0], sizes = [4, 255], strides = [1, 1]} : vector<4x256xf32> to vector<4x255xf32>
    %183 = tpu.concatenate %181, %182 in 1 : vector<4x1xf32>, vector<4x255xf32> -> vector<4x256xf32>
    %cst_65 = arith.constant 0.000000e+00 : f32
    %184 = vector.broadcast %cst_65 : f32 to vector<4x256xf32>
    %185 = arith.select %33, %183, %184 : vector<4x256xi1>, vector<4x256xf32>
    %186 = vector.extract_strided_slice %10 {offsets = [0, 3], sizes = [4, 1], strides = [1, 1]} : vector<4x9xf32> to vector<4x1xf32>
    %187 = vector.broadcast %186 : vector<4x1xf32> to vector<4x256xf32>
    %188 = arith.mulf %185, %187 : vector<4x256xf32>
    %189 = arith.addf %180, %188 : vector<4x256xf32>
    %190 = vector.extract_strided_slice %10 {offsets = [0, 4], sizes = [4, 1], strides = [1, 1]} : vector<4x9xf32> to vector<4x1xf32>
    %191 = vector.broadcast %190 : vector<4x1xf32> to vector<4x256xf32>
    %192 = arith.mulf %156, %191 : vector<4x256xf32>
    %193 = arith.addf %189, %192 : vector<4x256xf32>
    %cst_66 = arith.constant 0.000000e+00 : f32
    %194 = vector.broadcast %cst_66 : f32 to vector<4x1xf32>
    %195 = vector.extract_strided_slice %156 {offsets = [0, 1], sizes = [4, 255], strides = [1, 1]} : vector<4x256xf32> to vector<4x255xf32>
    %196 = tpu.concatenate %195, %194 in 1 : vector<4x255xf32>, vector<4x1xf32> -> vector<4x256xf32>
    %cst_67 = arith.constant 0.000000e+00 : f32
    %197 = vector.broadcast %cst_67 : f32 to vector<4x256xf32>
    %198 = arith.select %35, %196, %197 : vector<4x256xi1>, vector<4x256xf32>
    %199 = vector.extract_strided_slice %10 {offsets = [0, 5], sizes = [4, 1], strides = [1, 1]} : vector<4x9xf32> to vector<4x1xf32>
    %200 = vector.broadcast %199 : vector<4x1xf32> to vector<4x256xf32>
    %201 = arith.mulf %198, %200 : vector<4x256xf32>
    %202 = arith.addf %193, %201 : vector<4x256xf32>
    %cst_68 = arith.constant 0.000000e+00 : f32
    %203 = vector.broadcast %cst_68 : f32 to vector<4x15xf32>
    %204 = vector.extract_strided_slice %156 {offsets = [0, 15], sizes = [4, 241], strides = [1, 1]} : vector<4x256xf32> to vector<4x241xf32>
    %205 = tpu.concatenate %204, %203 in 1 : vector<4x241xf32>, vector<4x15xf32> -> vector<4x256xf32>
    %cst_69 = arith.constant 0.000000e+00 : f32
    %206 = vector.broadcast %cst_69 : f32 to vector<4x256xf32>
    %207 = arith.select %33, %205, %206 : vector<4x256xi1>, vector<4x256xf32>
    %208 = vector.extract_strided_slice %10 {offsets = [0, 6], sizes = [4, 1], strides = [1, 1]} : vector<4x9xf32> to vector<4x1xf32>
    %209 = vector.broadcast %208 : vector<4x1xf32> to vector<4x256xf32>
    %210 = arith.mulf %207, %209 : vector<4x256xf32>
    %211 = arith.addf %202, %210 : vector<4x256xf32>
    %cst_70 = arith.constant 0.000000e+00 : f32
    %212 = vector.broadcast %cst_70 : f32 to vector<4x16xf32>
    %213 = vector.extract_strided_slice %156 {offsets = [0, 16], sizes = [4, 240], strides = [1, 1]} : vector<4x256xf32> to vector<4x240xf32>
    %214 = tpu.concatenate %213, %212 in 1 : vector<4x240xf32>, vector<4x16xf32> -> vector<4x256xf32>
    %215 = vector.extract_strided_slice %10 {offsets = [0, 7], sizes = [4, 1], strides = [1, 1]} : vector<4x9xf32> to vector<4x1xf32>
    %216 = vector.broadcast %215 : vector<4x1xf32> to vector<4x256xf32>
    %217 = arith.mulf %214, %216 : vector<4x256xf32>
    %218 = arith.addf %211, %217 : vector<4x256xf32>
    %cst_71 = arith.constant 0.000000e+00 : f32
    %219 = vector.broadcast %cst_71 : f32 to vector<4x17xf32>
    %220 = vector.extract_strided_slice %156 {offsets = [0, 17], sizes = [4, 239], strides = [1, 1]} : vector<4x256xf32> to vector<4x239xf32>
    %221 = tpu.concatenate %220, %219 in 1 : vector<4x239xf32>, vector<4x17xf32> -> vector<4x256xf32>
    %cst_72 = arith.constant 0.000000e+00 : f32
    %222 = vector.broadcast %cst_72 : f32 to vector<4x256xf32>
    %223 = arith.select %35, %221, %222 : vector<4x256xi1>, vector<4x256xf32>
    %224 = vector.extract_strided_slice %10 {offsets = [0, 8], sizes = [4, 1], strides = [1, 1]} : vector<4x9xf32> to vector<4x1xf32>
    %225 = vector.broadcast %224 : vector<4x1xf32> to vector<4x256xf32>
    %226 = arith.mulf %223, %225 : vector<4x256xf32>
    %227 = arith.addf %218, %226 : vector<4x256xf32>
    %228 = arith.truncf %227 : vector<4x256xf32> to vector<4x256xbf16>
    %cst_73 = arith.constant dense<0.000000e+00> : vector<16x256xf32>
    %229 = tpu.matmul %3, %228, %cst_73 {dimension_numbers = #tpu.dot_dimension_numbers<[1], [0], [0], [1], [0, 0, 1, 1], [], []>} : vector<16x4xbf16>, vector<4x256xbf16>, vector<16x256xf32> -> vector<16x256xf32>
    %230 = arith.truncf %229 : vector<16x256xf32> to vector<16x256xbf16>
    %cst_74 = arith.constant dense<0.000000e+00> : vector<4x256xf32>
    %231 = tpu.matmul %5, %230, %cst_74 {dimension_numbers = #tpu.dot_dimension_numbers<[1], [0], [0], [1], [0, 0, 1, 1], [], []>} : vector<4x16xbf16>, vector<16x256xbf16>, vector<4x256xf32> -> vector<4x256xf32>
    %232 = vector.broadcast %11 : vector<4x1xf32> to vector<4x256xf32>
    %233 = arith.addf %231, %232 : vector<4x256xf32>
    %cst_75 = arith.constant 0.000000e+00 : f32
    %234 = vector.broadcast %cst_75 : f32 to vector<4x256xf32>
    %235 = arith.maximumf %233, %234 : vector<4x256xf32>
    %236 = arith.truncf %235 : vector<4x256xf32> to vector<4x256xbf16>
    %cst_76 = arith.constant dense<0.000000e+00> : vector<16x256xf32>
    %237 = tpu.matmul %7, %236, %cst_76 {dimension_numbers = #tpu.dot_dimension_numbers<[1], [0], [0], [1], [0, 0, 1, 1], [], []>} : vector<16x4xbf16>, vector<4x256xbf16>, vector<16x256xf32> -> vector<16x256xf32>
    %238 = vector.broadcast %12 : vector<16x1xf32> to vector<16x256xf32>
    %239 = arith.addf %237, %238 : vector<16x256xf32>
    %cst_77 = arith.constant dense<0.000000e+00> : vector<16xf32>
    %240 = vector.multi_reduction <add>, %229, %cst_77 [1] : vector<16x256xf32> to vector<16xf32>
    %241 = vector.shape_cast %240 : vector<16xf32> to vector<16x1xf32>
    %cst_78 = arith.constant 2.560000e+02 : f32
    %242 = vector.broadcast %cst_78 : f32 to vector<16x1xf32>
    %243 = arith.divf %241, %242 : vector<16x1xf32>
    %244 = vector.shape_cast %243 : vector<16x1xf32> to vector<16x1xf32>
    %245 = vector.broadcast %244 : vector<16x1xf32> to vector<16x256xf32>
    %cst_79 = arith.constant dense<0.000000e+00> : vector<4x256xf32>
    %246 = tpu.matmul %8, %245, %cst_79 {dimension_numbers = #tpu.dot_dimension_numbers<[1], [0], [0], [1], [0, 0, 1, 1], [], []>} : vector<4x16xf32>, vector<16x256xf32>, vector<4x256xf32> -> vector<4x256xf32>
    %247 = vector.broadcast %13 : vector<4x1xf32> to vector<4x256xf32>
    %248 = arith.addf %246, %247 : vector<4x256xf32>
    %cst_80 = arith.constant 0.000000e+00 : f32
    %249 = vector.broadcast %cst_80 : f32 to vector<4x256xf32>
    %250 = arith.maximumf %248, %249 : vector<4x256xf32>
    %cst_81 = arith.constant dense<0.000000e+00> : vector<16x256xf32>
    %251 = tpu.matmul %9, %250, %cst_81 {dimension_numbers = #tpu.dot_dimension_numbers<[1], [0], [0], [1], [0, 0, 1, 1], [], []>} : vector<16x4xf32>, vector<4x256xf32>, vector<16x256xf32> -> vector<16x256xf32>
    %252 = vector.broadcast %14 : vector<16x1xf32> to vector<16x256xf32>
    %253 = arith.addf %251, %252 : vector<16x256xf32>
    %254 = arith.negf %253 : vector<16x256xf32>
    %255 = math.exp %254 : vector<16x256xf32>
    %cst_82 = arith.constant 1.000000e+00 : f32
    %256 = vector.broadcast %cst_82 : f32 to vector<16x256xf32>
    %257 = arith.addf %256, %255 : vector<16x256xf32>
    %258 = arith.divf %256, %257 : vector<16x256xf32>
    %259 = arith.negf %239 : vector<16x256xf32>
    %260 = math.exp %259 : vector<16x256xf32>
    %cst_83 = arith.constant 1.000000e+00 : f32
    %261 = vector.broadcast %cst_83 : f32 to vector<16x256xf32>
    %262 = arith.addf %261, %260 : vector<16x256xf32>
    %263 = arith.divf %261, %262 : vector<16x256xf32>
    %264 = arith.addf %258, %263 : vector<16x256xf32>
    %265 = arith.addf %264, %229 : vector<16x256xf32>
    %266 = arith.addf %265, %154 : vector<16x256xf32>
    %c1_84 = arith.constant 1 : index
    %c0_85 = arith.constant 0 : index
    %c0_86 = arith.constant 0 : index
    %267 = vector.load %arg13[%c1_84, %c0_85, %c0_86] : memref<2x16x256xf32, #tpu.memory_space<vmem>>, vector<1x16x256xf32>
    %268 = vector.shape_cast %267 : vector<1x16x256xf32> to vector<16x256xf32>
    %269 = vector.shape_cast %266 : vector<16x256xf32> to vector<1x16x256xf32>
    tpu.vector_store %arg13[%c1_84, %c0_85, %c0_86], %269 {strides = array<i32>} : memref<2x16x256xf32, #tpu.memory_space<vmem>>, vector<1x16x256xf32>,
    return
  }
  func.func @transform_0(%arg0: i32) -> (i32, i32, i32) {
    %c0_i32 = arith.constant 0 : i32
    %c0_i32_0 = arith.constant 0 : i32
    %c0_i32_1 = arith.constant 0 : i32
    return %arg0, %c0_i32, %c0_i32_0 : i32, i32, i32
  }
  func.func @transform_1(%arg0: i32) -> (i32, i32) {
    %c0_i32 = arith.constant 0 : i32
    %c0_i32_0 = arith.constant 0 : i32
    %c0_i32_1 = arith.constant 0 : i32
    return %c0_i32, %c0_i32_0 : i32, i32
  }
  func.func @transform_2(%arg0: i32) -> (i32, i32) {
    %c0_i32 = arith.constant 0 : i32
    %c0_i32_0 = arith.constant 0 : i32
    %c0_i32_1 = arith.constant 0 : i32
    return %c0_i32, %c0_i32_0 : i32, i32
  }
  func.func @transform_3(%arg0: i32) -> (i32, i32) {
    %c0_i32 = arith.constant 0 : i32
    %c0_i32_0 = arith.constant 0 : i32
    %c0_i32_1 = arith.constant 0 : i32
    return %c0_i32, %c0_i32_0 : i32, i32
  }
  func.func @transform_4(%arg0: i32) -> (i32, i32) {
    %c0_i32 = arith.constant 0 : i32
    %c0_i32_0 = arith.constant 0 : i32
    %c0_i32_1 = arith.constant 0 : i32
    return %c0_i32, %c0_i32_0 : i32, i32
  }
  func.func @transform_5(%arg0: i32) -> (i32, i32) {
    %c0_i32 = arith.constant 0 : i32
    %c0_i32_0 = arith.constant 0 : i32
    %c0_i32_1 = arith.constant 0 : i32
    return %c0_i32, %c0_i32_0 : i32, i32
  }
  func.func @transform_6(%arg0: i32) -> (i32, i32) {
    %c0_i32 = arith.constant 0 : i32
    %c0_i32_0 = arith.constant 0 : i32
    %c0_i32_1 = arith.constant 0 : i32
    return %c0_i32, %c0_i32_0 : i32, i32
  }
  func.func @transform_7(%arg0: i32) -> (i32, i32) {
    %c0_i32 = arith.constant 0 : i32
    %c0_i32_0 = arith.constant 0 : i32
    %c0_i32_1 = arith.constant 0 : i32
    return %c0_i32, %c0_i32_0 : i32, i32
  }
  func.func @transform_8(%arg0: i32) -> (i32, i32) {
    %c0_i32 = arith.constant 0 : i32
    %c0_i32_0 = arith.constant 0 : i32
    %c0_i32_1 = arith.constant 0 : i32
    return %c0_i32, %c0_i32_0 : i32, i32
  }
  func.func @transform_9(%arg0: i32) -> (i32, i32) {
    %c0_i32 = arith.constant 0 : i32
    %c0_i32_0 = arith.constant 0 : i32
    %c0_i32_1 = arith.constant 0 : i32
    return %c0_i32, %c0_i32_0 : i32, i32
  }
  func.func @transform_10(%arg0: i32) -> (i32, i32) {
    %c0_i32 = arith.constant 0 : i32
    %c0_i32_0 = arith.constant 0 : i32
    %c0_i32_1 = arith.constant 0 : i32
    return %c0_i32, %c0_i32_0 : i32, i32
  }
  func.func @transform_11(%arg0: i32) -> (i32, i32) {
    %c0_i32 = arith.constant 0 : i32
    %c0_i32_0 = arith.constant 0 : i32
    %c0_i32_1 = arith.constant 0 : i32
    return %c0_i32, %c0_i32_0 : i32, i32
  }
  func.func @transform_12(%arg0: i32) -> (i32, i32, i32) {
    %c0_i32 = arith.constant 0 : i32
    %c0_i32_0 = arith.constant 0 : i32
    %c0_i32_1 = arith.constant 0 : i32
    return %arg0, %c0_i32, %c0_i32_0 : i32, i32, i32
  }
}

</mosaic_0001>

<bundles_post_ra>
// kernel: tpu_custom_call.1
= control target key start
LH: loop header
LB: loop body
LE: loop exit
PB: predicated region body
PF: predicated region fallthrough
CT: control target
= control target key end

     0   :  { %v1448_v5 = vmov 0   ;;  %v1449_v7 = vmov 2   ;;  %s2034_s0 = inlined_call_operand.vmem [shape: f32[2,16,256], index: 0, kind: input, shape index: {}]   ;;  %s2035_s1 = inlined_call_operand.vmem [shape: f32[4,16], index: 1, kind: input, shape index: {}]   ;;  %s2036_s2 = inlined_call_operand.vmem [shape: f32[4,9], index: 2, kind: input, shape index: {}]   ;;  %s2037_s3 = inlined_call_operand.vmem [shape: f32[16,4], index: 3, kind: input, shape index: {}]   ;;  %s2038_s4 = inlined_call_operand.vmem [shape: f32[4,16], index: 4, kind: input, shape index: {}]   ;;  %s2039_s5 = inlined_call_operand.vmem [shape: f32[4,1], index: 5, kind: input, shape index: {}]   ;;  %s2040_s6 = inlined_call_operand.vmem [shape: f32[16,4], index: 6, kind: input, shape index: {}]   ;;  %s2041_s7 = inlined_call_operand.vmem [shape: f32[16,1], index: 7, kind: input, shape index: {}]   ;;  %s2042_s8 = inlined_call_operand.vmem [shape: f32[4,16], index: 8, kind: input, shape index: {}]   ;;  %s2043_s9 = inlined_call_operand.vmem [shape: f32[4,1], index: 9, kind: input, shape index: {}]   ;;  %s2044_s10 = inlined_call_operand.vmem [shape: f32[16,4], index: 10, kind: input, shape index: {}]   ;;  %s2045_s11 = inlined_call_operand.vmem [shape: f32[16,1], index: 11, kind: input, shape index: {}]   ;;  %s2046_s12 = inlined_call_operand.hbm [shape: f32[2,16,256], index: 12, kind: output, shape index: {}]  }
   0x1   :  { %v1536_v0 = vld [vmem:[%s2034_s0 + $0x8] sm:$0xff]  ;;  %v1541_v1 = vld [vmem:[%s2034_s0 + $0x18] sm:$0xff]  ;;  %v1546_v2 = vld [vmem:[%s2034_s0] sm:$0xff]  ;;  %136 = vmatprep.mubr.bf16.mxu0 %v1448_v5  ;;  %1351 = vset.pattern.permute.xlu1 %v1449_v7 }
   0x2   :  { %v99_v3 = vpack.c.bf16 %v1541_v1, %v1536_v0  ;;  %v1553_v4 = vld [vmem:[%s2034_s0 + $0x10] sm:$0xff]  ;;  %v43_v6 = vld [vmem:[%s2035_s1] sm:$0xf]  ;;  %346 = vmatprep.mubr.bf16.mxu1 %v1448_v5 }
   0x3   :  { %v56_v8 = vld [vmem:[%s2036_s2] sm:$0xf]  ;;  %v98_v9 = vpack.c.bf16 %v1553_v4, %v1546_v2 }
   0x4   :  { %193 = vperm.xlu1 %1351, %v56_v8  }
   0x5   :  { %17 = vsyncpa [#allocation3], 0  ;;  %104 = vmatprep.subr.bf16.mxu0 %v99_v3  ;;  %v1565_v10 = vpack.c.bf16 %v43_v6, %v43_v6  ;;  %v1450_v11 = vmov 1   ;;  %vm100_vm0 = vcmask 130048   ;;  %v1451_v12 = vmov 3   ;;  %s1457_s1 = smov 15  }
   0x6   :  { %1350 = vset.pattern.permute.xlu0 %v1450_v11  ;;  %105 = vmatpush1.bf16.msra.mxu0 %v98_v9  ;;  %v1452_v13 = vmov 5   ;;  %v1453_v14 = vmov 4   ;;  %v1454_v15 = vmov 6   ;;  %v1455_v16 = vmov 7   ;;  %s1458_s2 = smov 17   ;;  %s1459_s15 = smov 16  }
   0x7   :  { %174 = vperm.xlu0 %1350, %v56_v8   ;;  %v1456_v17 = vmov 8   ;;  %s1460_s16 = smov 1   ;;  %s1461_s17 = smov 127   ;;  %v57_v22 = vld [vmem:[%s2039_s5] sm:$0xf]  ;;  %v63_v32 = vlaneseq  ;;  %vm151_vm1 = vcmask 138240  }
   0x8   :  { %1352 = vset.pattern.permute.xlu1 %v1451_v12  ;;  %s1462_s18 = smov 113   ;;  %s1463_s19 = smov 112   ;;  %vm185_vm3 = vcmask 121856   ;;  %vm204_vm4 = vcmask 7168   ;;  %vm231_vm8 = vcmask 1039360   ;;  %vm250_vm9 = vcmask 924672  }
   0x9   :  { %1280 = vmatmul.mubr.msk.bf16.vlgmr.msra.gmra.mrb[0].mxu0 %vm100_vm0, %v1565_v10  ;;  %212 = vperm.xlu1 %1352, %v56_v8   ;;  %s1464_s20 = smov 111   ;;  %v64_v33 = vand.u32 127, %v63_v32  ;;  %vm269_vm10 = vcmask 916480   ;;  %vm286_vm11 = vcmask 908288   ;;  %vm307_vm12 = vcmask 1041408   ;;  %v1908_v60 = vld [vmem:[%s2044_s10] sm:$0xff] }
   0xa   :  { %399 = vmatprep.mubr.bf16.mxu0 %v1448_v5  ;;  %vm303_vm13 = vcmask 31744   ;;  %vm580_vm14 = vcmask 1043456  }
   0xb   :  { %1354 = vset.pattern.permute.xlu0 %v1452_v13  ;;  %v70_v36 = vand.u32 15, %v64_v33  ;;  %v65_v39 = vadd.s32 128, %v64_v33 }
   0xc   :  { %239 = vperm.xlu0 %1354, %v56_v8  }
   0xd   :  { %1353 = vset.pattern.permute.xlu1 %v1453_v14  ;;  %vm1629_vm2 = vcmp.ge.s32.totalorder %v70_v36, 1  ;;  %v77_v46 = vand.u32 15, %v65_v39  ;;  %vm1637_vm5 = vcmp.le.s32.totalorder %v70_v36, 14 }
   0xe   :  { %220 = vperm.xlu1 %1353, %v56_v8  }
   0xf   :  { %vm1647_vm6 = vcmp.ge.s32.totalorder %v77_v46, 1  ;;  %vm1655_vm7 = vcmp.le.s32.totalorder %v77_v46, 14 }
  0x10   :  { %1355 = vset.pattern.permute.xlu0 %v1454_v15 }
  0x11   :  { %258 = vperm.xlu0 %1355, %v56_v8  }
  0x12   :  { %1357 = vset.pattern.permute.xlu1 %v1455_v16 }
  0x13   :  { %275 = vperm.xlu1 %1357, %v56_v8  }
  0x15   :  { %1356 = vset.pattern.permute.xlu0 %v1448_v5 }
  0x16   :  { %160 = vperm.xlu0 %1356, %v56_v8  }
  0x17   :  { %1358 = vset.pattern.permute.xlu1 %v1456_v17 }
  0x18   :  { %294 = vperm.xlu1 %1358, %v56_v8  }
  0x1c   :  { %1359 = vset.pattern.permute.xlu1 %v1448_v5 }
  0x83   :  { %v1611_v23 = vpop.permute.xlu1 %193 }
  0x86   :  { %v1613_v24 = vpop.permute.xlu0 %174 }
  0x88   :  { %v1615_v25 = vpop.permute.xlu1 %212 }
  0x8b   :  { %v1617_v26 = vpop.permute.xlu0 %239 }
  0x8d   :  { %v1619_v27 = vpop.permute.xlu1 %220 }
  0x90   :  { %v1623_v29 = vpop.permute.xlu0 %258 }
  0x92   :  { %v1621_v28 = vpop.permute.xlu1 %275 }
  0x95   :  { %v1627_v31 = vpop.permute.xlu0 %160 }
  0x97   :  { %v1625_v30 = vpop.permute.xlu1 %294 }
  0xdc   :  { %v1572_v18 = vpop.f32.mrb[0].mxu0 }
  0xdd   :  { %181 = vrot.lane.b32.xlu0 %v1572_v18, %s1457_s1  ;;  %147 = vrot.lane.b32.xlu1 %v1572_v18, %s1458_s2  ;;  %v1578_v19 = vpop.f32.mrb[1].mxu0 }
  0xde   :  { %v142_v20 = vpop.f32.mrb[2].mxu0 }
  0xdf   :  { %v143_v21 = vpop.f32.mrb[3].mxu0 }
  0xe1   :  { %165 = vrot.lane.b32.xlu1 %v1572_v18, %s1459_s15  ;;  %149 = vrot.lane.b32.xlu0 %v1578_v19, %s1458_s2 }
  0xe5   :  { %200 = vrot.lane.b32.xlu1 %v1572_v18, %s1460_s16  ;;  %167 = vrot.lane.b32.xlu0 %v1578_v19, %s1459_s15 }
  0xe9   :  { %227 = vrot.lane.b32.xlu1 %v1572_v18, %s1461_s17  ;;  %246 = vrot.lane.b32.xlu0 %v1572_v18, %s1462_s18 }
  0xed   :  { %183 = vrot.lane.b32.xlu1 %v1578_v19, %s1457_s1  ;;  %229 = vrot.lane.b32.xlu0 %v1578_v19, %s1461_s17 }
  0xf1   :  { %202 = vrot.lane.b32.xlu1 %v1578_v19, %s1460_s16  ;;  %265 = vrot.lane.b32.xlu0 %v1572_v18, %s1463_s19 }
  0xf5   :  { %248 = vrot.lane.b32.xlu1 %v1578_v19, %s1462_s18  ;;  %282 = vrot.lane.b32.xlu0 %v1572_v18, %s1464_s20 }
  0xf9   :  { %267 = vrot.lane.b32.xlu1 %v1578_v19, %s1463_s19  ;;  %361 = vperm.xlu0 %1356, %v57_v22  }
  0xfd   :  { %284 = vrot.lane.b32.xlu1 %v1578_v19, %s1464_s20 }
 0x14f   :  { %v182_v34 = vpop.permute.xlu0 %181  ;;  %v148_v35 = vpop.permute.xlu1 %147 }
 0x150   :  { %v155_v41 = vsel %vm151_vm1, 0.0, %v148_v35  ;;  %v189_v48 = vsel %vm185_vm3, 0.0, %v182_v34 }
 0x151   :  { %v156_v45 = vsel %vm1629_vm2, %v155_v41, 0.0  ;;  %v190_v54 = vsel %vm1637_vm5, %v189_v48, 0.0  ;;  %v224_v41 = vmul.f32 %v1619_v27, %v1578_v19 }
 0x152   :  { %v163_v50 = vmul.f32 %v1627_v31, %v156_v45  ;;  %v196_v61 = vmul.f32 %v1611_v23, %v190_v54 }
 0x153   :  { %v166_v37 = vpop.permute.xlu1 %165  ;;  %v150_v38 = vpop.permute.xlu0 %149 }
 0x154   :  { %v172_v42 = vsel %vm100_vm0, 0.0, %v166_v37  ;;  %v152_v56 = vsel %vm151_vm1, %v148_v35, %v150_v38  ;;  %v223_v35 = vmul.f32 %v1619_v27, %v1572_v18 }
 0x155   :  { %v177_v49 = vmul.f32 %v1613_v24, %v172_v42  ;;  %v157_v62 = vsel %vm1647_vm6, %v152_v56, 0.0 }
 0x156   :  { %v164_v13 = vmul.f32 %v1627_v31, %v157_v62 }
 0x157   :  { %v201_v43 = vpop.permute.xlu1 %200  ;;  %v168_v44 = vpop.permute.xlu0 %167  ;;  %v179_v57 = vadd.f32 %v177_v49, %v163_v50 }
 0x158   :  { %v208_v51 = vsel %vm204_vm4, 0.0, %v201_v43  ;;  %v169_v58 = vsel %vm100_vm0, %v166_v37, %v168_v44 }
 0x159   :  { %v209_v59 = vsel %vm1629_vm2, %v208_v51, 0.0  ;;  %v178_v6 = vmul.f32 %v1613_v24, %v169_v58  ;;  %v198_v8 = vadd.f32 %v196_v61, %v179_v57 }
 0x15a   :  { %v215_v9 = vmul.f32 %v1615_v25, %v209_v59 }
 0x15b   :  { %v228_v52 = vpop.permute.xlu1 %227  ;;  %v247_v53 = vpop.permute.xlu0 %246  ;;  %v180_v16 = vadd.f32 %v178_v6, %v164_v13 }
 0x15c   :  { %v217_v22 = vadd.f32 %v215_v9, %v198_v8 }
 0x15e   :  { %v225_v44 = vadd.f32 %v223_v35, %v217_v22  ;;  %v1725_v35 = vld [vmem:[%s2034_s0 + $0x28] sm:$0xff] }
 0x15f   :  { %v184_v63 = vpop.permute.xlu1 %183  ;;  %v230_v3 = vpop.permute.xlu0 %229 }
 0x160   :  { %v186_v7 = vsel %vm185_vm3, %v182_v34, %v184_v63  ;;  %v232_v12 = vsel %vm231_vm8, %v228_v52, %v230_v3  ;;  %v235_v17 = vsel %vm231_vm8, %v230_v3, 0.0 }
 0x161   :  { %v191_v11 = vsel %vm1655_vm7, %v186_v7, 0.0  ;;  %v236_v20 = vsel %vm1637_vm5, %v232_v12, 0.0  ;;  %v237_v36 = vsel %vm1655_vm7, %v235_v17, 0.0  ;;  %v46_v17 = vld [vmem:[%s2037_s3 + $0x8] sm:$0xff] }
 0x162   :  { %v197_v14 = vmul.f32 %v1611_v23, %v191_v11  ;;  %v242_v37 = vmul.f32 %v1617_v26, %v236_v20  ;;  %v243_v48 = vmul.f32 %v1617_v26, %v237_v36  ;;  %v1730_v36 = vld [vmem:[%s2034_s0 + $0x38] sm:$0xff] }
 0x163   :  { %v203_v15 = vpop.permute.xlu1 %202  ;;  %v266_v45 = vpop.permute.xlu0 %265 }
 0x164   :  { %v205_v21 = vsel %vm204_vm4, %v201_v43, %v203_v15  ;;  %v199_v33 = vadd.f32 %v197_v14, %v180_v16  ;;  %v244_v51 = vadd.f32 %v242_v37, %v225_v44  ;;  %v45_v16 = vld [vmem:[%s2037_s3] sm:$0xff] }
 0x165   :  { %v210_v32 = vsel %vm1647_vm6, %v205_v21, 0.0 }
 0x166   :  { %v216_v34 = vmul.f32 %v1615_v25, %v210_v32  ;;  %v1713_v32 = vpack.c.bf16 %v46_v17, %v45_v16  ;;  %v1465_v17 = vmov 0.0  }
 0x167   :  { %v249_v38 = vpop.permute.xlu1 %248  ;;  %v283_v62 = vpop.permute.xlu0 %282 }
 0x168   :  { %v218_v39 = vadd.f32 %v216_v34, %v199_v33  ;;  %v251_v42 = vsel %vm250_vm9, %v247_v53, %v249_v38  ;;  %v254_v43 = vsel %vm250_vm9, %v249_v38, 0.0 }
 0x169   :  { %v255_v46 = vsel %vm1629_vm2, %v251_v42, 0.0  ;;  %v256_v18 = vsel %vm1647_vm6, %v254_v43, 0.0  ;;  %v48_v42 = vld [vmem:[%s2038_s4] sm:$0xf] }
 0x16a   :  { %v226_v49 = vadd.f32 %v224_v41, %v218_v39  ;;  %v261_v50 = vmul.f32 %v1623_v29, %v255_v46  ;;  %v262_v53 = vmul.f32 %v1623_v29, %v256_v18  ;;  %v1752_v46 = vld [vmem:[%s2034_s0 + $0x20] sm:$0xff]  ;;  %v1757_v18 = vld [vmem:[%s2034_s0 + $0x30] sm:$0xff] }
 0x16b   :  { %v268_v19 = vpop.permute.xlu1 %267 }
 0x16c   :  { %v245_v52 = vadd.f32 %v243_v48, %v226_v49  ;;  %v270_v54 = vsel %vm269_vm10, %v266_v45, %v268_v19  ;;  %v273_v56 = vsel %vm269_vm10, %v268_v19, 0.0  ;;  %v263_v57 = vadd.f32 %v261_v50, %v244_v51  ;;  %v60_v50 = vld [vmem:[%s2043_s9] sm:$0xf] }
 0x16d   :  { %v278_v59 = vmul.f32 %v1621_v28, %v270_v54  ;;  %v279_v61 = vmul.f32 %v1621_v28, %v273_v56  ;;  %v734_v45 = vpack.c.bf16 %v1730_v36, %v1725_v35  ;;  %v1759_v48 = vpack.c.bf16 %v48_v42, %v48_v42 }
 0x16e   :  { %v264_v58 = vadd.f32 %v262_v53, %v245_v52  ;;  %v733_v49 = vpack.c.bf16 %v1757_v18, %v1752_v46 }
 0x16f   :  { %v285_v63 = vpop.permute.xlu1 %284  ;;  %v280_v9 = vadd.f32 %v278_v59, %v263_v57 }
 0x170   :  { %v287_v3 = vsel %vm286_vm11, %v283_v62, %v285_v63  ;;  %v290_v6 = vsel %vm286_vm11, %v285_v63, 0.0  ;;  %v281_v13 = vadd.f32 %v279_v61, %v264_v58 }
 0x171   :  { %v291_v7 = vsel %vm1637_vm5, %v287_v3, 0.0  ;;  %v292_v8 = vsel %vm1655_vm7, %v290_v6, 0.0  ;;  %v50_v6 = vld [vmem:[%s2040_s6] sm:$0xff] }
 0x172   :  { %v297_v11 = vmul.f32 %v1625_v30, %v291_v7  ;;  %v298_v12 = vmul.f32 %v1625_v30, %v292_v8  ;;  %v51_v7 = vld [vmem:[%s2040_s6 + $0x8] sm:$0xff] }
 0x174   :  { %v300_v14 = vadd.f32 %v298_v12, %v281_v13  ;;  %v299_v15 = vadd.f32 %v297_v11, %v280_v9 }
 0x176   :  { %v302_v20 = vpack.c.bf16 %v300_v14, %v300_v14  ;;  %v301_v21 = vpack.c.bf16 %v299_v15, %v299_v15  ;;  %v1792_v14 = vpack.c.bf16 %v51_v7, %v50_v6 }
 0x178   :  { %1281 = vmatprep.subr.msk.bf16.mxu1 %vm307_vm12, %v302_v20  ;;  %v309_v22 = vsel %vm307_vm12, %v301_v21, 0  ;;  %v1772_v51 = vpop.permute.xlu0 %361  ;;  %v1808_v20 = vld [vmem:[%s2042_s8] sm:$0xf] }
 0x179   :  { %315 = vmatpush1.bf16.msra.mxu1 %v309_v22 }
 0x17c   :  { %1282 = vmatmul.mubr.msk.bf16.vlgmr.msra.gmra.mrb[0].mxu1 %vm303_vm13, %v1713_v32 }
 0x17d   :  { %463 = vmatprep.mubr.bf16.mxu1 %v1448_v5 }
 0x24f   :  { %v1718_v33 = vpop.f32.mrb[0].mxu1 }
 0x250   :  { %v1720_v34 = vpop.f32.mrb[1].mxu1 }
 0x251   :  { %v1732_v37 = vpop.f32.mrb[2].mxu1  ;;  %v474_v38 = vadd.f32 %v1720_v34, %v1718_v33 }
 0x252   :  { %v357_v39 = vpack.c.bf16 %v1732_v37, %v1718_v33  ;;  %v1738_v41 = vpop.f32.mrb[3].mxu1 }
 0x253   :  { %v358_v43 = vpack.c.bf16 %v1738_v41, %v1720_v34  ;;  %475 = vadd.xlane.f32.xlu1 %v474_v38  ;;  %v477_v44 = vadd.f32 %v1738_v41, %v1732_v37 }
 0x255   :  { %478 = vadd.xlane.f32.xlu0 %v477_v44  ;;  %367 = vmatprep.subr.bf16.mxu0 %v358_v43 }
 0x256   :  { %368 = vmatpush1.bf16.msra.mxu0 %v357_v39 }
 0x257   :  { %735 = vmatprep.subr.bf16.mxu0 %v734_v45 }
 0x259   :  { %1283 = vmatmul.mubr.msk.bf16.vlgmr.msra.gmra.mrb[4].mxu0 %vm100_vm0, %v1759_v48 }
 0x25a   :  { %736 = vmatpush1.bf16.msra.mxu0 %v733_v49  ;;  %767 = vmatprep.mubr.bf16.mxu0 %v1448_v5 }
 0x261   :  { %1303 = vmatmul.mubr.msk.bf16.vlgmr.msra.gmra.mrb[8].mxu0 %vm100_vm0, %v1565_v10 }
 0x262   :  { %973 = vmatprep.mubr.bf16.mxu0 %v1448_v5 }
 0x26b   :  { %485 = vperm.xlu0 %1356, %v60_v50  }
 0x2e0   :  { %v476_v10 = vpop.xlane.xlu1 %475 }
 0x2e1   :  { %v481_v8 = vmul.f32 0.00390625, %v476_v10 }
 0x2e2   :  { %v479_v54 = vpop.xlane.xlu0 %478 }
 0x2e3   :  { %v482_v62 = vmul.f32 0.00390625, %v479_v54 }
 0x2e5   :  { %v1322_v12 = vpack.c.bf16 %v482_v62, %v481_v8 }
 0x2ea   :  { %v1833_v38 = vpop.permute.xlu0 %485 }
 0x32c   :  { %v401_v19 = vpop.f32.mrb[4].mxu0 }
 0x32d   :  { %v402_v52 = vadd.f32 %v401_v19, %v1772_v51  ;;  %v403_v53 = vpop.f32.mrb[5].mxu0 }
 0x32e   :  { %v404_v56 = vadd.f32 %v403_v53, %v1772_v51  ;;  %v405_v57 = vpop.f32.mrb[6].mxu0 }
 0x32f   :  { %v408_v58 = vmax.f32 %v402_v52, 0.0  ;;  %v406_v59 = vpop.f32.mrb[7].mxu0 }
 0x330   :  { %v409_v61 = vmax.f32 %v404_v56, 0.0 }
 0x331   :  { %v410_v63 = vpack.c.bf16 %v408_v58, %v408_v58 }
 0x332   :  { %v411_v3 = vpack.c.bf16 %v409_v61, %v409_v61 }
 0x333   :  { %v426_v9 = vsel %vm307_vm12, %v410_v63, 0 }
 0x334   :  { %1284 = vmatprep.subr.msk.bf16.mxu1 %vm307_vm12, %v411_v3  ;;  %v1784_v11 = vpop.f32.mrb[8].mxu0 }
 0x335   :  { %802 = vrot.lane.b32.xlu0 %v1784_v11, %s1457_s1  ;;  %778 = vrot.lane.b32.xlu1 %v1784_v11, %s1458_s2  ;;  %v1790_v13 = vpop.f32.mrb[9].mxu0 }
 0x336   :  { %432 = vmatpush1.bf16.msra.mxu1 %v426_v9  ;;  %v773_v15 = vpop.f32.mrb[10].mxu0 }
 0x337   :  { %1323 = vmatprep.subr.bf16.mxu1 %v1322_v12  ;;  %v774_v16 = vpop.f32.mrb[11].mxu0 }
 0x339   :  { %1285 = vmatmul.mubr.msk.bf16.vlgmr.msra.gmra.mrb[4].mxu1 %vm303_vm13, %v1792_v14  ;;  %816 = vrot.lane.b32.xlu0 %v1784_v11, %s1460_s16 }
 0x33a   :  { %790 = vrot.lane.b32.xlu1 %v1784_v11, %s1459_s15  ;;  %1325 = vmatpush1.bf16.msra.mxu1 %v1322_v12 }
 0x33b   :  { %555 = vmatprep.mubr.f32.mxu1 %v1465_v17 }
 0x33d   :  { %780 = vrot.lane.b32.xlu0 %v1790_v13, %s1458_s2 }
 0x33e   :  { %834 = vrot.lane.b32.xlu1 %v1784_v11, %s1461_s17 }
 0x341   :  { %1286 = vmatmul.mubr.msk.f32.vlgmr.msra.gmra.mrb[8].mxu1 %vm100_vm0, %v1808_v20  ;;  %836 = vrot.lane.b32.xlu0 %v1790_v13, %s1461_s17 }
 0x342   :  { %792 = vrot.lane.b32.xlu1 %v1790_v13, %s1459_s15  ;;  %651 = vmatprep.mubr.f32.mxu1 %v1465_v17 }
 0x345   :  { %850 = vrot.lane.b32.xlu0 %v1790_v13, %s1462_s18 }
 0x346   :  { %804 = vrot.lane.b32.xlu1 %v1790_v13, %s1457_s1 }
 0x349   :  { %864 = vrot.lane.b32.xlu0 %v1790_v13, %s1463_s19 }
 0x34a   :  { %818 = vrot.lane.b32.xlu1 %v1790_v13, %s1460_s16 }
 0x34d   :  { %876 = vrot.lane.b32.xlu0 %v1790_v13, %s1464_s20 }
 0x34e   :  { %848 = vrot.lane.b32.xlu1 %v1784_v11, %s1462_s18 }
 0x352   :  { %862 = vrot.lane.b32.xlu1 %v1784_v11, %s1463_s19 }
 0x356   :  { %874 = vrot.lane.b32.xlu1 %v1784_v11, %s1464_s20 }
 0x3a7   :  { %v779_v21 = vpop.permute.xlu1 %778  ;;  %v803_v42 = vpop.permute.xlu0 %802 }
 0x3a8   :  { %v785_v50 = vsel %vm151_vm1, 0.0, %v779_v21  ;;  %v809_v59 = vsel %vm185_vm3, 0.0, %v803_v42 }
 0x3a9   :  { %v786_v56 = vsel %vm1629_vm2, %v785_v50, 0.0  ;;  %v810_v7 = vsel %vm1637_vm5, %v809_v59, 0.0 }
 0x3aa   :  { %v788_v3 = vmul.f32 %v786_v56, %v1627_v31 }
 0x3ab   :  { %v817_v44 = vpop.permute.xlu0 %816 }
 0x3ac   :  { %v791_v22 = vpop.permute.xlu1 %790  ;;  %v823_v12 = vsel %vm204_vm4, 0.0, %v817_v44 }
 0x3ad   :  { %v797_v19 = vsel %vm100_vm0, 0.0, %v791_v22 }
 0x3ae   :  { %v798_v10 = vmul.f32 %v797_v19, %v1613_v24 }
 0x3af   :  { %v781_v49 = vpop.permute.xlu0 %780 }
 0x3b0   :  { %v835_v39 = vpop.permute.xlu1 %834  ;;  %v782_v53 = vsel %vm151_vm1, %v779_v21, %v781_v49  ;;  %v800_v15 = vadd.f32 %v798_v10, %v788_v3 }
 0x3b1   :  { %v787_v62 = vsel %vm1647_vm6, %v782_v53, 0.0 }
 0x3b2   :  { %v789_v16 = vmul.f32 %v787_v62, %v1627_v31 }
 0x3b3   :  { %v837_v58 = vpop.permute.xlu0 %836 }
 0x3b4   :  { %v793_v43 = vpop.permute.xlu1 %792  ;;  %v841_v31 = vsel %vm231_vm8, %v837_v58, 0.0 }
 0x3b5   :  { %v794_v57 = vsel %vm100_vm0, %v791_v22, %v793_v43  ;;  %v843_v10 = vsel %vm1655_vm7, %v841_v31, 0.0 }
 0x3b6   :  { %v799_v6 = vmul.f32 %v794_v57, %v1613_v24  ;;  %v845_v3 = vmul.f32 %v843_v10, %v1617_v26 }
 0x3b7   :  { %v851_v22 = vpop.permute.xlu0 %850 }
 0x3b8   :  { %v805_v45 = vpop.permute.xlu1 %804  ;;  %v801_v43 = vadd.f32 %v799_v6, %v789_v16 }
 0x3b9   :  { %v806_v54 = vsel %vm185_vm3, %v803_v42, %v805_v45  ;;  %v812_v42 = vmul.f32 %v810_v7, %v1611_v23  ;;  %v824_v45 = vsel %vm1629_vm2, %v823_v12, 0.0 }
 0x3ba   :  { %v811_v63 = vsel %vm1655_vm7, %v806_v54, 0.0 }
 0x3bb   :  { %v813_v21 = vmul.f32 %v811_v63, %v1611_v23  ;;  %v814_v49 = vadd.f32 %v812_v42, %v800_v15  ;;  %v865_v54 = vpop.permute.xlu0 %864  ;;  %v831_v23 = vmul.f32 %v1790_v13, %v1619_v27 }
 0x3bc   :  { %v819_v52 = vpop.permute.xlu1 %818  ;;  %v869_v16 = vsel %vm269_vm10, %v865_v54, 0.0 }
 0x3bd   :  { %v820_v61 = vsel %vm204_vm4, %v817_v44, %v819_v52  ;;  %v815_v50 = vadd.f32 %v813_v21, %v801_v43  ;;  %v826_v52 = vmul.f32 %v824_v45, %v1615_v25  ;;  %v838_v44 = vsel %vm231_vm8, %v835_v39, %v837_v58 }
 0x3be   :  { %v825_v8 = vsel %vm1647_vm6, %v820_v61, 0.0  ;;  %v842_v59 = vsel %vm1637_vm5, %v838_v44, 0.0  ;;  %v855_v39 = vsel %vm250_vm9, %v851_v22, 0.0 }
 0x3bf   :  { %v827_v24 = vmul.f32 %v825_v8, %v1615_v25  ;;  %v828_v56 = vadd.f32 %v826_v52, %v814_v49  ;;  %v830_v25 = vmul.f32 %v1784_v11, %v1619_v27  ;;  %v844_v13 = vmul.f32 %v842_v59, %v1617_v26  ;;  %v877_v7 = vpop.permute.xlu0 %876 }
 0x3c0   :  { %v849_v9 = vpop.permute.xlu1 %848  ;;  %v857_v6 = vsel %vm1647_vm6, %v855_v39, 0.0  ;;  %v881_v42 = vsel %vm286_vm11, %v877_v7, 0.0 }
 0x3c1   :  { %v829_v53 = vadd.f32 %v827_v24, %v815_v50  ;;  %v852_v57 = vsel %vm250_vm9, %v849_v9, %v851_v22  ;;  %v832_v63 = vadd.f32 %v830_v25, %v828_v56  ;;  %v859_v40 = vmul.f32 %v857_v6, %v1623_v29  ;;  %v1920_v25 = vld [vmem:[%s2044_s10 + $0x8] sm:$0xff] }
 0x3c2   :  { %v856_v61 = vsel %vm1629_vm2, %v852_v57, 0.0  ;;  %v883_v47 = vsel %vm1655_vm7, %v881_v42, 0.0 }
 0x3c3   :  { %v833_v58 = vadd.f32 %v831_v23, %v829_v53  ;;  %v858_v9 = vmul.f32 %v856_v61, %v1623_v29  ;;  %v846_v12 = vadd.f32 %v844_v13, %v832_v63  ;;  %v871_v29 = vmul.f32 %v869_v16, %v1621_v28 }
 0x3c4   :  { %v863_v19 = vpop.permute.xlu1 %862  ;;  %v885_v52 = vmul.f32 %v883_v47, %v1625_v30 }
 0x3c5   :  { %v847_v8 = vadd.f32 %v845_v3, %v833_v58  ;;  %v866_v11 = vsel %vm269_vm10, %v863_v19, %v865_v54  ;;  %v860_v22 = vadd.f32 %v858_v9, %v846_v12  ;;  %v59_v9 = vld [vmem:[%s2041_s7 + $0x8] sm:$0xff] }
 0x3c6   :  { %v870_v43 = vmul.f32 %v866_v11, %v1621_v28  ;;  %v58_v11 = vld [vmem:[%s2041_s7] sm:$0xff]  ;;  %s1466_s7 = smov [#allocation2]  }
 0x3c7   :  { %v861_v21 = vadd.f32 %v859_v40, %v847_v8 }
 0x3c8   :  { %v875_v62 = vpop.permute.xlu1 %874  ;;  %v872_v19 = vadd.f32 %v870_v43, %v860_v22 }
 0x3c9   :  { %v878_v27 = vsel %vm286_vm11, %v875_v62, %v877_v7  ;;  %v873_v50 = vadd.f32 %v871_v29, %v861_v21 }
 0x3ca   :  { %v882_v26 = vsel %vm1637_vm5, %v878_v27, 0.0  ;;  %v61_v27 = vld [vmem:[%s2045_s11] sm:$0xff] }
 0x3cb   :  { %v884_v49 = vmul.f32 %v882_v26, %v1625_v30  ;;  %v887_v56 = vadd.f32 %v885_v52, %v873_v50 }
 0x3cd   :  { %v886_v44 = vadd.f32 %v884_v49, %v872_v19  ;;  %v889_v10 = vpack.c.bf16 %v887_v56, %v887_v56 }
 0x3cf   :  { %v888_v28 = vpack.c.bf16 %v886_v44, %v886_v44 }
 0x3d1   :  { %v891_v30 = vsel %vm307_vm12, %v888_v28, 0 }
 0x40c   :  { %v1885_v15 = vpop.f32.mrb[4].mxu1 }
 0x40d   :  { %v1890_v55 = vpop.f32.mrb[5].mxu1 }
 0x40e   :  { %v1894_v24 = vpop.f32.mrb[6].mxu1 }
 0x40f   :  { %v1896_v45 = vpop.f32.mrb[7].mxu1 }
 0x414   :  { %v557_v31 = vpop.f32.mrb[8].mxu1 }
 0x415   :  { %v558_v53 = vadd.f32 %v557_v31, %v1833_v38  ;;  %v559_v54 = vpop.f32.mrb[9].mxu1 }
 0x416   :  { %v560_v23 = vadd.f32 %v559_v54, %v1833_v38 }
 0x417   :  { %v562_v59 = vmax.f32 %v558_v53, 0.0 }
 0x418   :  { %v563_v57 = vmax.f32 %v560_v23, 0.0 }
 0x41a   :  { %1287 = vmatprep.subr.msk.mxu1 %vm580_vm14, %v563_v57 }
 0x41b   :  { %1288 = vmatpush1.msk.msra.mxu1 %vm580_vm14, %v562_v59 }
 0x41c   :  { %1289 = vmatmul.mubr.msk.f32.vlgmr.msra.gmra.mrb[10].mxu1 %vm303_vm13, %v1908_v60  ;;  %1304 = vmatprep.subr.msk.bf16.mxu1 %vm307_vm12, %v889_v10 }
 0x41d   :  { %897 = vmatpush1.bf16.msra.mxu1 %v891_v30  ;;  %657 = vmatprep.mubr.f32.mxu1 %v1465_v17 }
 0x420   :  { %1290 = vmatmul.mubr.msk.f32.gmra.mrb[12].mxu1 %vm303_vm13, %v1920_v25 }
 0x421   :  { %928 = vmatprep.mubr.bf16.mxu1 %v1448_v5 }
 0x424   :  { %1305 = vmatmul.mubr.msk.bf16.vlgmr.msra.gmra.mrb[16].mxu1 %vm303_vm13, %v1713_v32 }
 0x425   :  { %1024 = vmatprep.mubr.bf16.mxu1 %v1448_v5 }
 0x4ef   :  { %v653_v39 = vpop.f32.mrb[10].mxu1 }
 0x4f0   :  { %v655_v58 = vpop.f32.mrb[11].mxu1 }
 0x4f3   :  { %v659_v61 = vpop.f32.mrb[12].mxu1 }
 0x4f4   :  { %v661_v62 = vpop.f32.mrb[13].mxu1 }
 0x4f7   :  { %v1928_v63 = vpop.f32.mrb[16].mxu1 }
 0x4f8   :  { %v1930_v13 = vpop.f32.mrb[17].mxu1 }
 0x4f9   :  { %v1932_v3 = vpop.f32.mrb[18].mxu1  ;;  %v1035_v6 = vadd.f32 %v1930_v13, %v1928_v63 }
 0x4fa   :  { %v939_v7 = vpack.c.bf16 %v1932_v3, %v1928_v63  ;;  %v1938_v8 = vpop.f32.mrb[19].mxu1 }
 0x4fb   :  { %v940_v5 = vpack.c.bf16 %v1938_v8, %v1930_v13  ;;  %1036 = vadd.xlane.f32.xlu1 %v1035_v6  ;;  %v1038_v32 = vadd.f32 %v1938_v8, %v1932_v3 }
 0x4fd   :  { %1039 = vadd.xlane.f32.xlu0 %v1038_v32  ;;  %941 = vmatprep.subr.bf16.mxu0 %v940_v5 }
 0x4fe   :  { %942 = vmatpush1.bf16.msra.mxu0 %v939_v7 }
 0x501   :  { %1306 = vmatmul.mubr.msk.bf16.vlgmr.msra.gmra.mrb[12].mxu0 %vm100_vm0, %v1759_v48  ;;  %v62_v48 = vld [vmem:[%s2045_s11 + $0x8] sm:$0xff]  ;;  %s1269_s11 = sshll.u32 %s1466_s7, 4  ;;  %s1270_s11 = int_to_ptr.vmem [resolvable:$true] %s1269_s11 }
 0x502   :  { %1107 = vmatprep.mubr.f32.mxu0 %v1465_v17  ;;  %s1424_s28 = scalar_lea.vmem %s1270_s11, 1024  ;;  %p1429_p1 = scmp.lt.s32.totalorder %s1270_s11, %s1270_s11 }
 0x503   :  { %p1425_p0 = scmp.ne.s32.totalorder %s1270_s11, %s1424_s28  ;;  %p1430_p2 = scmp.lt.s32.totalorder %s1424_s28, %s1424_s28 }
 0x505   :  { %p1431_p3 = por %p1430_p2, %p1429_p1 }
 0x507   :  { %p1432_p4 = pnand %p1431_p3, %p1425_p0 }
 0x50c   :  { %419 = vperm.xlu1 %1359, %v59_v9  }
 0x510   :  { %566 = vperm.xlu1 %1359, %v61_v27  }
 0x513   :  { %414 = vperm.xlu0 %1356, %v58_v11  }
 0x517   :  { %571 = vperm.xlu0 %1356, %v62_v48  }
 0x588   :  { %v1037_v12 = vpop.xlane.xlu1 %1036 }
 0x589   :  { %v1041_v16 = vmul.f32 0.00390625, %v1037_v12 }
 0x58a   :  { %v1040_v40 = vpop.xlane.xlu0 %1039 }
 0x58b   :  { %v1042_v26 = vmul.f32 0.00390625, %v1040_v40 }
 0x58c   :  { %v1959_v21 = vpop.permute.xlu1 %419 }
 0x58d   :  { %v1326_v22 = vpack.c.bf16 %v1042_v26, %v1041_v16  ;;  %v470_v42 = vadd.f32 %v1894_v24, %v1959_v21  ;;  %v472_v43 = vadd.f32 %v1896_v45, %v1959_v21 }
 0x58f   :  { %v1297_v29 = vmul.f32 -1.442695, %v470_v42  ;;  %1327 = vmatprep.subr.bf16.mxu0 %v1326_v22  ;;  %v1298_v49 = vmul.f32 -1.442695, %v472_v43 }
 0x590   :  { %v1965_v47 = vpop.permute.xlu1 %566  ;;  %1329 = vmatpush1.bf16.msra.mxu0 %v1326_v22 }
 0x591   :  { %v654_v50 = vadd.f32 %v653_v39, %v1965_v47  ;;  %v656_v19 = vadd.f32 %v655_v58, %v1965_v47  ;;  %1360 = vpow2.f32 %v1297_v29 }
 0x592   :  { %v1969_v52 = vpop.permute.xlu0 %414  ;;  %1362 = vpow2.f32 %v1298_v49 }
 0x593   :  { %v1291_v44 = vmul.f32 -1.442695, %v654_v50  ;;  %v1292_v31 = vmul.f32 -1.442695, %v656_v19  ;;  %v466_v24 = vadd.f32 %v1885_v15, %v1969_v52  ;;  %v468_v45 = vadd.f32 %v1890_v55, %v1969_v52  ;;  %1309 = vmatmul.mubr.msk.f32.vlgmr.msra.gmra.mrb[16].mxu0 %vm100_vm0, %v1808_v20 }
 0x594   :  { %1186 = vmatprep.mubr.f32.mxu0 %v1465_v17 }
 0x595   :  { %1364 = vpow2.f32 %v1291_v44  ;;  %v1295_v53 = vmul.f32 -1.442695, %v466_v24  ;;  %v1296_v54 = vmul.f32 -1.442695, %v468_v45 }
 0x596   :  { %1366 = vpow2.f32 %v1292_v31  ;;  %v1978_v56 = vpop.permute.xlu0 %571 }
 0x597   :  { %1368 = vpow2.f32 %v1295_v53  ;;  %v660_v23 = vadd.f32 %v659_v61, %v1978_v56  ;;  %v662_v15 = vadd.f32 %v661_v62, %v1978_v56 }
 0x598   :  { %1370 = vpow2.f32 %v1296_v54 }
 0x599   :  { %v1293_v57 = vmul.f32 -1.442695, %v660_v23  ;;  %v1294_v55 = vmul.f32 -1.442695, %v662_v15 }
 0x59b   :  { %1372 = vpow2.f32 %v1293_v57  ;;  %v1361_v28 = vpop.eup %1360 }
 0x59c   :  { %1374 = vpow2.f32 %v1294_v55  ;;  %v1363_v20 = vpop.eup %1362  ;;  %v702_v7 = vadd.f32 1.0, %v1361_v28 }
 0x59d   :  { %v703_v32 = vadd.f32 1.0, %v1363_v20 }
 0x59f   :  { %v1365_v59 = vpop.eup %1364 }
 0x5a0   :  { %v1367_v10 = vpop.eup %1366  ;;  %v676_v30 = vadd.f32 1.0, %v1365_v59 }
 0x5a1   :  { %v1369_v39 = vpop.eup %1368  ;;  %v677_v58 = vadd.f32 1.0, %v1367_v10 }
 0x5a2   :  { %v1371_v6 = vpop.eup %1370  ;;  %1376 = vrcp.f32 %v676_v30  ;;  %v700_v5 = vadd.f32 1.0, %v1369_v39 }
 0x5a3   :  { %1378 = vrcp.f32 %v677_v58  ;;  %v701_v61 = vadd.f32 1.0, %v1371_v6 }
 0x5a4   :  { %1380 = vrcp.f32 %v700_v5 }
 0x5a5   :  { %v1373_v62 = vpop.eup %1372  ;;  %1382 = vrcp.f32 %v701_v61 }
 0x5a6   :  { %v1375_v9 = vpop.eup %1374  ;;  %1384 = vrcp.f32 %v702_v7  ;;  %v678_v27 = vadd.f32 1.0, %v1373_v62 }
 0x5a7   :  { %1386 = vrcp.f32 %v703_v32  ;;  %v679_v11 = vadd.f32 1.0, %v1375_v9 }
 0x5a8   :  { %1388 = vrcp.f32 %v678_v27 }
 0x5a9   :  { %1390 = vrcp.f32 %v679_v11 }
 0x5ac   :  { %v1377_v48 = vpop.eup %1376 }
 0x5ad   :  { %v1379_v12 = vpop.eup %1378 }
 0x5ae   :  { %v1381_v40 = vpop.eup %1380 }
 0x5af   :  { %v1383_v16 = vpop.eup %1382  ;;  %v712_v26 = vadd.f32 %v1381_v40, %v1377_v48 }
 0x5b0   :  { %v1385_v22 = vpop.eup %1384  ;;  %v713_v42 = vadd.f32 %v1383_v16, %v1379_v12 }
 0x5b1   :  { %v1387_v43 = vpop.eup %1386  ;;  %v716_v29 = vadd.f32 %v712_v26, %v1718_v33 }
 0x5b2   :  { %v1389_v49 = vpop.eup %1388  ;;  %v717_v50 = vadd.f32 %v713_v42, %v1720_v34 }
 0x5b3   :  { %v1391_v19 = vpop.eup %1390  ;;  %v720_v44 = vadd.f32 %v716_v29, %v1546_v2  ;;  %v714_v31 = vadd.f32 %v1389_v49, %v1385_v22 }
 0x5b4   :  { %v721_v24 = vadd.f32 %v717_v50, %v1536_v0  ;;  %v715_v45 = vadd.f32 %v1391_v19, %v1387_v43 }
 0x5b5   :  { %724 = vst [vmem:[#allocation2] sm:$0xff] %v720_v44  ;;  %v718_v53 = vadd.f32 %v714_v31, %v1732_v37 }
 0x5b6   :  { %725 = vst [vmem:[#allocation2 + $0x8] sm:$0xff] %v721_v24  ;;  %v719_v54 = vadd.f32 %v715_v45, %v1738_v41 }
 0x5b7   :  { %v722_v23 = vadd.f32 %v718_v53, %v1553_v4 }
 0x5b8   :  { %v723_v33 = vadd.f32 %v719_v54, %v1541_v1 }
 0x5b9   :  { %726 = vst [vmem:[#allocation2 + $0x10] sm:$0xff] %v722_v23 }
 0x5ba   :  { %727 = vst [vmem:[#allocation2 + $0x18] sm:$0xff] %v723_v33 }
 0x5d4   :  { %v975_v34 = vpop.f32.mrb[12].mxu0 }
 0x5d5   :  { %v976_v15 = vadd.f32 %v975_v34, %v1772_v51  ;;  %v977_v2 = vpop.f32.mrb[13].mxu0 }
 0x5d6   :  { %v978_v57 = vadd.f32 %v977_v2, %v1772_v51  ;;  %v979_v0 = vpop.f32.mrb[14].mxu0 }
 0x5d7   :  { %v982_v55 = vmax.f32 %v976_v15, 0.0  ;;  %v980_v28 = vpop.f32.mrb[15].mxu0 }
 0x5d8   :  { %v983_v20 = vmax.f32 %v978_v57, 0.0 }
 0x5d9   :  { %v984_v37 = vpack.c.bf16 %v982_v55, %v982_v55 }
 0x5da   :  { %v985_v59 = vpack.c.bf16 %v983_v20, %v983_v20 }
 0x5db   :  { %v987_v41 = vsel %vm307_vm12, %v984_v37, 0 }
 0x5dc   :  { %1307 = vmatprep.subr.msk.bf16.mxu1 %vm307_vm12, %v985_v59 }
 0x5dd   :  { %993 = vmatpush1.bf16.msra.mxu1 %v987_v41 }
 0x5e0   :  { %1308 = vmatmul.mubr.msk.bf16.vlgmr.msra.gmra.mrb[20].mxu1 %vm303_vm13, %v1792_v14 }
 0x666   :  { %v1109_v1 = vpop.f32.mrb[16].mxu0 }
 0x667   :  { %v1110_v4 = vadd.f32 %v1109_v1, %v1833_v38  ;;  %v1111_v10 = vpop.f32.mrb[17].mxu0 }
 0x668   :  { %v1112_v51 = vadd.f32 %v1111_v10, %v1833_v38 }
 0x669   :  { %v1114_v39 = vmax.f32 %v1110_v4, 0.0 }
 0x66a   :  { %v1115_v30 = vmax.f32 %v1112_v51, 0.0 }
 0x66c   :  { %1310 = vmatprep.subr.msk.mxu0 %vm580_vm14, %v1115_v30 }
 0x66d   :  { %1311 = vmatpush1.msk.msra.mxu0 %vm580_vm14, %v1114_v39 }
 0x66e   :  { %1312 = vmatmul.mubr.msk.f32.vlgmr.msra.gmra.mrb[18].mxu0 %vm303_vm13, %v1908_v60 }
 0x66f   :  { %1192 = vmatprep.mubr.f32.mxu0 %v1465_v17 }
 0x672   :  { %1313 = vmatmul.mubr.msk.f32.gmra.mrb[20].mxu0 %vm303_vm13, %v1920_v25 }
 0x6b3   :  { %v1026_v14 = vpop.f32.mrb[20].mxu1 }
 0x6b4   :  { %v1028_v58 = vpop.f32.mrb[21].mxu1  ;;  %v1027_v38 = vadd.f32 %v1026_v14, %v1969_v52 }
 0x6b5   :  { %v1030_v6 = vpop.f32.mrb[22].mxu1  ;;  %v1029_v5 = vadd.f32 %v1028_v58, %v1969_v52 }
 0x6b6   :  { %v1032_v7 = vpop.f32.mrb[23].mxu1  ;;  %v1318_v32 = vmul.f32 -1.442695, %v1027_v38  ;;  %v1031_v61 = vadd.f32 %v1030_v6, %v1959_v21 }
 0x6b7   :  { %v1319_v62 = vmul.f32 -1.442695, %v1029_v5  ;;  %v1033_v9 = vadd.f32 %v1032_v7, %v1959_v21 }
 0x6b8   :  { %1392 = vpow2.f32 %v1318_v32  ;;  %v1320_v60 = vmul.f32 -1.442695, %v1031_v61 }
 0x6b9   :  { %1394 = vpow2.f32 %v1319_v62  ;;  %v1321_v27 = vmul.f32 -1.442695, %v1033_v9 }
 0x6ba   :  { %1396 = vpow2.f32 %v1320_v60 }
 0x6bb   :  { %1398 = vpow2.f32 %v1321_v27 }
 0x6c2   :  { %v1393_v43 = vpop.eup %1392 }
 0x6c3   :  { %v1395_v29 = vpop.eup %1394  ;;  %v1235_v49 = vadd.f32 1.0, %v1393_v43 }
 0x6c4   :  { %v1236_v50 = vadd.f32 1.0, %v1395_v29 }
 0x741   :  { %v1188_v17 = vpop.f32.mrb[18].mxu0 }
 0x742   :  { %v1189_v25 = vadd.f32 %v1188_v17, %v1965_v47  ;;  %v1190_v11 = vpop.f32.mrb[19].mxu0 }
 0x743   :  { %v1191_v48 = vadd.f32 %v1190_v11, %v1965_v47  ;;  %v1397_v47 = vpop.eup %1396 }
 0x744   :  { %v1314_v12 = vmul.f32 -1.442695, %v1189_v25  ;;  %v1399_v19 = vpop.eup %1398  ;;  %v1237_v45 = vadd.f32 1.0, %v1397_v47 }
 0x745   :  { %v1315_v40 = vmul.f32 -1.442695, %v1191_v48  ;;  %v1194_v52 = vpop.f32.mrb[20].mxu0  ;;  %v1238_v54 = vadd.f32 1.0, %v1399_v19 }
 0x746   :  { %1400 = vpow2.f32 %v1314_v12  ;;  %v1195_v16 = vadd.f32 %v1194_v52, %v1978_v56  ;;  %v1196_v26 = vpop.f32.mrb[21].mxu0 }
 0x747   :  { %1402 = vpow2.f32 %v1315_v40  ;;  %v1197_v21 = vadd.f32 %v1196_v26, %v1978_v56 }
 0x748   :  { %v1316_v22 = vmul.f32 -1.442695, %v1195_v16 }
 0x749   :  { %v1317_v42 = vmul.f32 -1.442695, %v1197_v21 }
 0x74a   :  { %1404 = vpow2.f32 %v1316_v22 }
 0x74b   :  { %1406 = vpow2.f32 %v1317_v42 }
 0x74c   :  { %1408 = vrcp.f32 %v1235_v49 }
 0x74d   :  { %1410 = vrcp.f32 %v1236_v50 }
 0x750   :  { %v1401_v44 = vpop.eup %1400 }
 0x751   :  { %v1403_v31 = vpop.eup %1402  ;;  %v1211_v24 = vadd.f32 1.0, %v1401_v44 }
 0x752   :  { %v1212_v53 = vadd.f32 1.0, %v1403_v31 }
 0x753   :  { %1412 = vrcp.f32 %v1211_v24 }
 0x754   :  { %v1405_v56 = vpop.eup %1404  ;;  %1414 = vrcp.f32 %v1212_v53 }
 0x755   :  { %v1407_v23 = vpop.eup %1406  ;;  %1416 = vrcp.f32 %v1237_v45  ;;  %v1213_v33 = vadd.f32 1.0, %v1405_v56 }
 0x756   :  { %1418 = vrcp.f32 %v1238_v54  ;;  %v1214_v34 = vadd.f32 1.0, %v1407_v23  ;;  %v1409_v15 = vpop.eup %1408 }
 0x757   :  { %1420 = vrcp.f32 %v1213_v33  ;;  %v1411_v2 = vpop.eup %1410 }
 0x758   :  { %1422 = vrcp.f32 %v1214_v34 }
 0x75d   :  { %v1413_v57 = vpop.eup %1412 }
 0x75e   :  { %v1415_v0 = vpop.eup %1414  ;;  %v1247_v55 = vadd.f32 %v1413_v57, %v1409_v15 }
 0x75f   :  { %v1417_v28 = vpop.eup %1416  ;;  %v1248_v20 = vadd.f32 %v1415_v0, %v1411_v2 }
 0x760   :  { %v1419_v37 = vpop.eup %1418  ;;  %v1251_v59 = vadd.f32 %v1247_v55, %v1928_v63 }
 0x761   :  { %v1421_v41 = vpop.eup %1420  ;;  %v1252_v1 = vadd.f32 %v1248_v20, %v1930_v13 }
 0x762   :  { %v1423_v4 = vpop.eup %1422  ;;  %v1255_v10 = vadd.f32 %v1752_v46, %v1251_v59  ;;  %v1249_v51 = vadd.f32 %v1421_v41, %v1417_v28 }
 0x763   :  { %v1256_v30 = vadd.f32 %v1725_v35, %v1252_v1  ;;  %v1250_v39 = vadd.f32 %v1423_v4, %v1419_v37 }
 0x764   :  { %1260 = vst [vmem:[#allocation2 + $0x20] sm:$0xff] %v1255_v10  ;;  %v1253_v14 = vadd.f32 %v1249_v51, %v1932_v3 }
 0x765   :  { %1261 = vst [vmem:[#allocation2 + $0x28] sm:$0xff] %v1256_v30  ;;  %v1254_v58 = vadd.f32 %v1250_v39, %v1938_v8 }
 0x766   :  { %v1257_v63 = vadd.f32 %v1757_v18, %v1253_v14 }
 0x767   :  { %v1258_v6 = vadd.f32 %v1730_v36, %v1254_v58 }
 0x768   :  { %1262 = vst [vmem:[#allocation2 + $0x30] sm:$0xff] %v1257_v63 }
 0x769   :  { %1263 = vst [vmem:[#allocation2 + $0x38] sm:$0xff] %v1258_v6 }
 0x76a   :  { %1435 = shalt.err (!%p1432_p4)
}
 0x76b   :  { %s1436_s13 = scalar_lea.hbm %s2046_s12, 1024 }
 0x76c   :  { %p1437_p5 = scmp.ne.s32.totalorder %s2046_s12, %s1436_s13  ;;  %p1440_p6 = scmp.lt.u32.totalorder %s1436_s13, %s2046_s12 }
 0x76e   :  { %p1442_p7 = pnand %p1440_p6, %p1437_p5 }
 0x770   :  { %1445 = shalt.err (!%p1442_p7)
}
 0x771   :  { %s1467_s4 = smov 256  }
 0x772   :  { %1275 = dma.vmem_to_hbm [thread:$0]  %s1270_s11, 1024, %s2046_s12, [#allocation3], %s1467_s4, %s1467_s4, %s1459_s15  }
 0x773   :  { %1446 = dma.done.wait [#allocation3], 1024  }
 0x774   :  { %1447 = vsyncadd [#allocation3], 4294966272 }
 0x775   :  { %1279 = vsyncpa [#allocation3], 1 }

</bundles_post_ra>
